<compile_context>
chip_gen: v6e
topology: v6e:2x2x1
jax: 0.10.0
libtpu: 0.0.40
codegen_flags: <defaults>
</compile_context>

<pallas_src>
import functools

import numpy as np
import jax
import jax.numpy as jnp
from jax import lax
from jax.experimental import pallas as pl
from jax.experimental.pallas import tpu as pltpu


class Configer:
    """Minimal stand-in for the original `configer` object."""

    def __init__(self, d):
        self._d = dict(d)

    def get(self, key, default=None):
        return self._d.get(key, default)


def _round_up(x, m):
    return ((x + m - 1) // m) * m


def _num_tensorcores():
    # Megacore sharding of the "parallel" grid axis only pays on v7x (2 TC / chip).
    try:
        kind = jax.devices()[0].device_kind.lower()
        return 2 if "v7" in kind else 1
    except Exception:
        return 1


_TMP_BUDGET = 24 * 1024 * 1024   # live f32 (TM, Np) temporaries per tile (~10 passes)


def _pick_tm(n_pad, num_cores):
    """Largest row tile (multiple of 128 that divides n_pad) whose f32 temporaries fit
    the budget; on v7x additionally require the tile count to be a multiple of the
    core count so both TensorCores stay busy."""
    best = 128
    for tm in range(128, n_pad + 1, 128):
        if n_pad % tm:
            continue
        if num_cores > 1 and (n_pad // tm) % num_cores:
            continue
        if tm > 128 and 10 * tm * n_pad * 4 > _TMP_BUDGET:
            continue
        best = tm
    return best


def _vmem_limit_bytes(tm, n_pad, d_pad):
    slab = d_pad * n_pad * 2 * 2              # (D, N) bf16 contrast slab, double buffered
    lhs = tm * d_pad * 2 * 2                  # (TM, D) bf16 LHS tile, double buffered
    meta = (8 * n_pad + 2 * tm * 128 + 8 * 128) * 4 * 2   # label/weight views + output
    tmp = 10 * tm * n_pad * 4                 # f32 elementwise temporaries
    need = slab + lhs + meta + tmp
    return int(min(max(need * 5 // 4, 16 * 1024 * 1024), 64 * 1024 * 1024))


# ------------------------------------------------------------------------
# Pallas kernel for `_contrastive` (row-tiled)
# ------------------------------------------------------------------------
def _make_contrastive_kernel(temperature, base_temperature):
    t = float(temperature)
    coef = -(float(temperature) / float(base_temperature))
    neg_big = -1e30   # plain Python float -> folded as a literal (no captured constant)

    def kernel(a_t_ref, a_f_ref, lblr_ref, lblc_ref, aw_ref, out_ref):
        a_t = a_t_ref[...]                   # (TM, Dp) bf16, rows pre-scaled by 1/t
        a_f = a_f_ref[...]                   # (Dp, Np) bf16, unscaled, pre-transposed

        # (TM, Np) logits on the MXU: bf16 inputs, f32 accumulation, no RHS transpose.
        logits = lax.dot_general(a_t, a_f, (((1,), (0,)), ((), ())),
                                 preferred_element_type=jnp.float32)

        lblr = lblr_ref[...]                 # (1, Np)  labels (row view); -1 on padding
        lblc = lblc_ref[...]                 # (TM, 1)  labels for this tile's rows
        aw = aw_ref[...]                     # (TM, 1)  anchor weights (0 on padding / bg)

        # Fold column validity in once: padded columns -> -1e30, so exp() there is
        # exactly 0 and they drop out of every later reduction.
        logits = jnp.where(lblr >= 0.0, logits, neg_big)

        row_max = jnp.max(logits, axis=1, keepdims=True)
        logits = logits - row_max            # detach is a no-op in the forward pass
        exp_logits = jnp.exp(logits)         # EUP; exactly 0 at invalid columns

        eq = lblc == lblr                    # (TM, Np) same-label mask (incl. diagonal)
        neg_sum = jnp.sum(jnp.where(eq, 0.0, exp_logits), axis=1, keepdims=True)
        log_prob = logits - jnp.log(exp_logits + neg_sum)

        # Positives = same label excluding self.  Instead of iota/diagonal masking over
        # the (TM, Np) block, subtract the diagonal term, recomputed from the narrow
        # (TM, Dp) tile:  a_t is pre-scaled by 1/t, so (a.a)/t = t * sum(a_t^2).
        a_t32 = a_t.astype(jnp.float32)
        diag_logit = t * jnp.sum(a_t32 * a_t32, axis=1, keepdims=True) - row_max
        diag_log_prob = diag_logit - jnp.log(jnp.exp(diag_logit) + neg_sum)

        pos_cnt = jnp.sum(jnp.where(eq, 1.0, 0.0), axis=1, keepdims=True) - 1.0
        pos_sum = (jnp.sum(jnp.where(eq, log_prob, 0.0), axis=1, keepdims=True)
                   - diag_log_prob)

        # TODO(synk): rows with zero positives divide by max(cnt,1) here, whereas the
        # PyTorch reference divides by 0 and yields NaN; the sampler guarantees cnt >= 1.
        mean_log_prob_pos = pos_sum / jnp.maximum(pos_cnt, 1.0)   # exact (TM,1) divide

        # Hard-gate padded / non-anchor rows before the reduction (no inf*0 risk).
        per_row = jnp.where(aw > 0.0, coef * mean_log_prob_pos * aw, 0.0)

        num = jnp.sum(per_row, axis=0, keepdims=True)          # (1,1) tile partial
        den = jnp.sum(aw, axis=0, keepdims=True)               # (1,1) tile partial

        # Single lane-dense (1, 8, 128) output block: num on sublane 0, den elsewhere.
        sub = lax.broadcasted_iota(jnp.int32, (1, 8, 128), 1)
        out_ref[...] = jnp.where(
            sub == 0,
            jnp.broadcast_to(num.reshape(1, 1, 1), (1, 8, 128)),
            jnp.broadcast_to(den.reshape(1, 1, 1), (1, 8, 128)))

    return kernel


@functools.partial(jax.jit, static_argnames=("temperature", "base_temperature",
                                              "bg_anchor", "num_cores"))
def _contrastive_loss_jit(feats_, labels_, *, temperature, base_temperature,
                          bg_anchor, num_cores):
    """feats_: (anchor_num, n_view, D) f32;  labels_: (anchor_num,) f32."""
    anchor_num, n_view, feat_dim = feats_.shape
    n_total = anchor_num * n_view

    # contrast_feature = cat(unbind(feats_, dim=1), dim=0)  (view-major ordering)
    a_mat = jnp.transpose(feats_, (1, 0, 2)).reshape(n_total, feat_dim)
    a_mat = a_mat.astype(jnp.float32)
    lbl = jnp.tile(labels_.astype(jnp.float32), n_view)               # (N,)

    n_pad = max(128, _round_up(n_total, 128))
    d_pad = max(128, _round_up(feat_dim, 128))
    tm = _pick_tm(n_pad, num_cores)
    num_tiles = n_pad // tm

    a_pad = jnp.zeros((n_pad, d_pad), jnp.float32).at[:n_total, :feat_dim].set(a_mat)
    a_lhs = (a_pad * (1.0 / float(temperature))).astype(jnp.bfloat16)   # scaled LHS rows
    a_rhs = a_pad.astype(jnp.bfloat16).T                                # (Dp, Np) unscaled

    # Real class ids are >= 0; padding rows/cols carry -1 (doubles as the validity flag).
    lbl_pad = jnp.full((n_pad,), -1.0, jnp.float32).at[:n_total].set(lbl)
    valid = jnp.arange(n_pad) < n_total
    if bg_anchor:
        anchor_w = valid.astype(jnp.float32)
    else:
        anchor_w = jnp.logical_and(valid, lbl_pad != 0.0).astype(jnp.float32)

    lbl_row = lbl_pad.reshape(1, n_pad)       # lane-dense row view (shared by all tiles)
    lbl_col = lbl_pad.reshape(n_pad, 1)       # per-row view, tiled (TM, 1)
    aw_col = anchor_w.reshape(n_pad, 1)       # per-row view, tiled (TM, 1)

    kernel = _make_contrastive_kernel(temperature, base_temperature)
    out = pl.pallas_call(
        kernel,
        out_shape=jax.ShapeDtypeStruct((num_tiles, 8, 128), jnp.float32),
        grid=(num_tiles,),
        in_specs=[
            pl.BlockSpec((tm, d_pad), lambda i: (i, 0)),      # LHS row tile (pipelined)
            pl.BlockSpec((d_pad, n_pad), lambda i: (0, 0)),   # contrast slab (resident)
            pl.BlockSpec((1, n_pad), lambda i: (0, 0)),       # labels, row view
            pl.BlockSpec((tm, 1), lambda i: (i, 0)),          # labels, this tile's rows
            pl.BlockSpec((tm, 1), lambda i: (i, 0)),          # anchor weights, this tile
        ],
        out_specs=pl.BlockSpec((1, 8, 128), lambda i: (i, 0, 0)),
        compiler_params=pltpu.CompilerParams(
            dimension_semantics=("parallel",),
            vmem_limit_bytes=_vmem_limit_bytes(tm, n_pad, d_pad)),
    )(a_lhs, a_rhs, lbl_row, lbl_col, aw_col)

    loss_sum = jnp.sum(out[:, 0, 0])
    w_sum = jnp.sum(out[:, 1, 0])
    return loss_sum / w_sum


def contrastive_loss_pallas(feats_, labels_, temperature, base_temperature,
                            bg_anchor=True):
    return _contrastive_loss_jit(feats_, labels_,
                                 temperature=float(temperature),
                                 base_temperature=float(base_temperature),
                                 bg_anchor=bool(bg_anchor),
                                 num_cores=_num_tensorcores())


# ------------------------------------------------------------------------
# Module (host glue in numpy; hot path in the Pallas kernel above)
# ------------------------------------------------------------------------
class PixelContrastLossPallas:
    def __init__(self, configer):
        self.configer = configer
        self.bg_anchor = configer.get('bg_anchor', True)
        self.temperature = configer.get('temperature', 0.1)
        self.base_temperature = configer.get('base_temperature', 0.07)
        self.max_samples = configer.get('max_samples', 1024)
        self.max_views = configer.get('max_views', 100)
        self.ignore_label = 255

    @staticmethod
    def _nearest_interp(labels, out_hw):
        # PyTorch F.interpolate(mode='nearest'): in_idx = floor(out_idx * in/out)
        b, h, w = labels.shape
        ho, wo = out_hw
        ri = (np.arange(ho) * h) // ho
        ci = (np.arange(wo) * w) // wo
        return labels[:, ri][:, :, ci]

    def _hard_anchor_sampling_idx(self, y_hat, y):
        """Host-side sampler that returns flat gather indices into (B*HW, C) plus
        per-anchor class labels; the feature tensor itself stays on device."""
        # TODO(synk): torch.randperm replaced by a seeded numpy permutation
        # (sampling is inherently random; kept deterministic here).
        rng = np.random.RandomState(0)
        batch_size, hw = y_hat.shape
        classes, total_classes = [], 0
        for ii in range(batch_size):
            this_y = y_hat[ii]
            this_classes = [c for c in np.unique(this_y) if c != self.ignore_label]
            this_classes = [c for c in this_classes
                            if (this_y == c).sum() > self.max_views]
            classes.append(this_classes)
            total_classes += len(this_classes)
        if total_classes == 0:
            return None, None
        n_view = min(self.max_samples // total_classes, self.max_views)
        idx_ = np.zeros((total_classes, n_view), dtype=np.int64)
        y_ = np.zeros((total_classes,), dtype=np.float32)
        ptr = 0
        for ii in range(batch_size):
            this_y_hat, this_y = y_hat[ii], y[ii]
            for cls_id in classes[ii]:
                hard = np.nonzero((this_y_hat == cls_id) & (this_y != cls_id))[0]
                easy = np.nonzero((this_y_hat == cls_id) & (this_y == cls_id))[0]
                num_hard, num_easy = hard.shape[0], easy.shape[0]
                if num_hard >= n_view / 2 and num_easy >= n_view / 2:
                    num_hard_keep = n_view // 2
                    num_easy_keep = n_view - num_hard_keep
                elif num_hard >= n_view / 2:
                    num_easy_keep = num_easy
                    num_hard_keep = n_view - num_easy_keep
                elif num_easy >= n_view / 2:
                    num_hard_keep = num_hard
                    num_easy_keep = n_view - num_hard_keep
                else:
                    raise Exception('this should never be touched! {} {} {}'
                                    .format(num_hard, num_easy, n_view))
                hard = hard[rng.permutation(num_hard)[:num_hard_keep]]
                easy = easy[rng.permutation(num_easy)[:num_easy_keep]]
                idx_[ptr] = ii * hw + np.concatenate([hard, easy], axis=0)
                y_[ptr] = cls_id
                ptr += 1
        return idx_, y_

    def forward(self, feats, labels=None, predict=None):
        feats = jnp.asarray(feats, dtype=jnp.float32)        # features stay on device
        labels_np = np.asarray(labels)
        predict_np = np.asarray(predict)
        b, c, h, w = feats.shape
        labels_np = self._nearest_interp(labels_np.astype(np.float32), (h, w))
        labels_np = labels_np.astype(np.int64)
        assert labels_np.shape[-1] == feats.shape[-1]
        labels_np = labels_np.reshape(b, -1)
        predict_np = predict_np.reshape(b, -1)
        idx_, labels_ = self._hard_anchor_sampling_idx(labels_np, predict_np)
        if idx_ is None:
            return None
        # Device-side gather: (B, C, H, W) -> (B*HW, C) -> (total_classes, n_view, C)
        feats_flat = jnp.transpose(feats, (0, 2, 3, 1)).reshape(b * h * w, c)
        feats_ = jnp.take(feats_flat, jnp.asarray(idx_.reshape(-1)), axis=0)
        feats_ = feats_.reshape(idx_.shape[0], idx_.shape[1], c)
        return contrastive_loss_pallas(feats_, jnp.asarray(labels_),
                                       self.temperature, self.base_temperature,
                                       bg_anchor=self.bg_anchor)


# ------------------------------------------------------------------------
# Pure numpy reference for the contrastive part (f64), for a correctness check
# ------------------------------------------------------------------------
def _contrastive_ref(feats_, labels_, t, bt, bg_anchor=True):
    anchor_num, n_view, d = feats_.shape
    a = np.transpose(feats_.astype(np.float64), (1, 0, 2)).reshape(-1, d)
    n = a.shape[0]
    logits = (a @ a.T) / t
    logits = logits - logits.max(axis=1, keepdims=True)
    lbl = np.tile(labels_.astype(np.float64), n_view)
    mask = (lbl[:, None] == lbl[None, :]).astype(np.float64)
    neg_mask = 1.0 - mask
    mask = mask * (1.0 - np.eye(n))
    exp_logits = np.exp(logits)
    neg_sum = (exp_logits * neg_mask).sum(1, keepdims=True)
    log_prob = logits - np.log(exp_logits + neg_sum)
    mlpp = (mask * log_prob).sum(1) / mask.sum(1)
    if not bg_anchor:
        mlpp = mlpp[lbl != 0]
    return float((-(t / bt) * mlpp).mean())


if __name__ == "__main__":
    config = Configer({
        'bg_anchor': True,
        'temperature': 0.1,
        'base_temperature': 0.07,
        'max_samples': 64,
        'max_views': 16,
    })
    module = PixelContrastLossPallas(config)

    key = jax.random.PRNGKey(0)
    k_feat, k_lbl, k_pred = jax.random.split(key, 3)

    B, C, H, W = 2, 32, 16, 16
    feats = jax.random.normal(k_feat, (B, C, H, W), dtype=jnp.float32)
    # L2-normalize along channel dim (as a projection head would), keeps
    # logits/temperature numerically sane — semantics of the loss unchanged.
    feats = feats / jnp.linalg.norm(feats, axis=1, keepdims=True)
    labels = jax.random.randint(k_lbl, (B, 2 * H, 2 * W), 0, 3)   # GT at 2x res
    predict = jax.random.randint(k_pred, (B, H, W), 0, 3)

    loss = module.forward(feats, labels, predict)
    loss = jax.block_until_ready(loss)

    # Cross-check against a numpy f64 reference using the same (deterministic) sampler.
    feats_np = np.asarray(feats, dtype=np.float32)
    lbl_i = module._nearest_interp(np.asarray(labels).astype(np.float32), (H, W))
    lbl_i = lbl_i.astype(np.int64).reshape(B, -1)
    idx_, y_ = module._hard_anchor_sampling_idx(lbl_i,
                                                np.asarray(predict).reshape(B, -1))
    feats_flat_np = np.transpose(feats_np, (0, 2, 3, 1)).reshape(B * H * W, C)
    f_ = feats_flat_np[idx_.reshape(-1)].reshape(idx_.shape[0], idx_.shape[1], C)
    ref = _contrastive_ref(f_, y_, module.temperature, module.base_temperature,
                           module.bg_anchor)

    assert np.isfinite(float(loss)), "kernel produced non-finite loss"
    # Tolerance budget: bf16 MXU inputs bound logit accuracy to ~0.4% relative, and the
    # diagonal logit is recomputed from the bf16 tile (tiny extra discrepancy).
    assert np.allclose(float(loss), ref, rtol=2e-2, atol=2e-3), (float(loss), ref)
    print("KERNEL_OK")
</pallas_src>

<mosaic_0001>
module attributes {stable_mosaic.version = 11 : i64} {
  func.func @kernel(%arg0: i32, %arg1: memref<128x128xbf16, #tpu.memory_space<vmem>>, %arg2: memref<128x128xbf16, #tpu.memory_space<vmem>>, %arg3: memref<1x128xf32, #tpu.memory_space<vmem>>, %arg4: memref<128x1xf32, #tpu.memory_space<vmem>>, %arg5: memref<128x1xf32, #tpu.memory_space<vmem>>, %arg6: memref<1x8x128xf32, #tpu.memory_space<vmem>>) attributes {dimension_semantics = [#tpu.dimension_semantics<parallel>], iteration_bounds = array<i64: 1>, scalar_prefetch = 0 : i64, scratch_operands = 0 : i64, tpu.core_type = #tpu.core_type<tc>, window_params = [{transform_indices = @transform_0, window_bounds = array<i64: 128, 128>}, {pipeline_mode = #tpu.pipeline_mode<synchronous>, transform_indices = @transform_1, window_bounds = array<i64: 128, 128>}, {pipeline_mode = #tpu.pipeline_mode<synchronous>, transform_indices = @transform_2, window_bounds = array<i64: 1, 128>}, {transform_indices = @transform_3, window_bounds = array<i64: 128, 1>}, {transform_indices = @transform_4, window_bounds = array<i64: 128, 1>}, {transform_indices = @transform_5, window_bounds = array<i64: 1, 8, 128>}]} {
    %c0 = arith.constant 0 : index
    %c0_0 = arith.constant 0 : index
    %0 = vector.load %arg1[%c0, %c0_0] : memref<128x128xbf16, #tpu.memory_space<vmem>>, vector<128x128xbf16>
    %c0_1 = arith.constant 0 : index
    %c0_2 = arith.constant 0 : index
    %1 = vector.load %arg2[%c0_1, %c0_2] : memref<128x128xbf16, #tpu.memory_space<vmem>>, vector<128x128xbf16>
    %cst = arith.constant dense<0.000000e+00> : vector<128x128xf32>
    %2 = tpu.matmul %0, %1, %cst {dimension_numbers = #tpu.dot_dimension_numbers<[1], [0], [0], [1], [0, 0, 1, 1], [], []>} : vector<128x128xbf16>, vector<128x128xbf16>, vector<128x128xf32> -> vector<128x128xf32>
    %c0_3 = arith.constant 0 : index
    %c0_4 = arith.constant 0 : index
    %3 = vector.load %arg3[%c0_3, %c0_4] : memref<1x128xf32, #tpu.memory_space<vmem>>, vector<1x128xf32>
    %c0_5 = arith.constant 0 : index
    %c0_6 = arith.constant 0 : index
    %4 = vector.load %arg4[%c0_5, %c0_6] : memref<128x1xf32, #tpu.memory_space<vmem>>, vector<128x1xf32>
    %c0_7 = arith.constant 0 : index
    %c0_8 = arith.constant 0 : index
    %5 = vector.load %arg5[%c0_7, %c0_8] : memref<128x1xf32, #tpu.memory_space<vmem>>, vector<128x1xf32>
    %cst_9 = arith.constant 0.000000e+00 : f32
    %6 = vector.broadcast %cst_9 : f32 to vector<1x128xf32>
    %7 = arith.cmpf oge, %3, %6 : vector<1x128xf32>
    %cst_10 = arith.constant -1.000000e+30 : f32
    %8 = vector.shape_cast %7 : vector<1x128xi1> to vector<1x128xi1>
    %9 = vector.broadcast %8 : vector<1x128xi1> to vector<128x128xi1>
    %10 = vector.broadcast %cst_10 : f32 to vector<128x128xf32>
    %11 = arith.select %9, %2, %10 : vector<128x128xi1>, vector<128x128xf32>
    %cst_11 = arith.constant dense<0xFF800000> : vector<128xf32>
    %12 = vector.multi_reduction <maximumf>, %11, %cst_11 [1] : vector<128x128xf32> to vector<128xf32>
    %13 = vector.shape_cast %12 : vector<128xf32> to vector<128x1xf32>
    %14 = vector.broadcast %13 : vector<128x1xf32> to vector<128x128xf32>
    %15 = arith.subf %11, %14 : vector<128x128xf32>
    %16 = math.exp %15 : vector<128x128xf32>
    %17 = vector.broadcast %4 : vector<128x1xf32> to vector<128x128xf32>
    %18 = vector.broadcast %3 : vector<1x128xf32> to vector<128x128xf32>
    %19 = arith.cmpf oeq, %17, %18 : vector<128x128xf32>
    %cst_12 = arith.constant 0.000000e+00 : f32
    %20 = vector.broadcast %cst_12 : f32 to vector<128x128xf32>
    %21 = arith.select %19, %20, %16 : vector<128x128xi1>, vector<128x128xf32>
    %cst_13 = arith.constant dense<0.000000e+00> : vector<128xf32>
    %22 = vector.multi_reduction <add>, %21, %cst_13 [1] : vector<128x128xf32> to vector<128xf32>
    %23 = vector.shape_cast %22 : vector<128xf32> to vector<128x1xf32>
    %24 = vector.broadcast %23 : vector<128x1xf32> to vector<128x128xf32>
    %25 = arith.addf %16, %24 : vector<128x128xf32>
    %26 = math.log %25 : vector<128x128xf32>
    %27 = arith.subf %15, %26 : vector<128x128xf32>
    %28 = arith.extf %0 : vector<128x128xbf16> to vector<128x128xf32>
    %29 = arith.mulf %28, %28 : vector<128x128xf32>
    %cst_14 = arith.constant dense<0.000000e+00> : vector<128xf32>
    %30 = vector.multi_reduction <add>, %29, %cst_14 [1] : vector<128x128xf32> to vector<128xf32>
    %31 = vector.shape_cast %30 : vector<128xf32> to vector<128x1xf32>
    %cst_15 = arith.constant 1.000000e-01 : f32
    %32 = vector.broadcast %cst_15 : f32 to vector<128x1xf32>
    %33 = arith.mulf %32, %31 : vector<128x1xf32>
    %34 = arith.subf %33, %13 : vector<128x1xf32>
    %35 = math.exp %34 : vector<128x1xf32>
    %36 = arith.addf %35, %23 : vector<128x1xf32>
    %37 = math.log %36 : vector<128x1xf32>
    %38 = arith.subf %34, %37 : vector<128x1xf32>
    %cst_16 = arith.constant 1.000000e+00 : f32
    %cst_17 = arith.constant 0.000000e+00 : f32
    %39 = vector.broadcast %cst_16 : f32 to vector<128x128xf32>
    %40 = vector.broadcast %cst_17 : f32 to vector<128x128xf32>
    %41 = arith.select %19, %39, %40 : vector<128x128xi1>, vector<128x128xf32>
    %cst_18 = arith.constant dense<0.000000e+00> : vector<128xf32>
    %42 = vector.multi_reduction <add>, %41, %cst_18 [1] : vector<128x128xf32> to vector<128xf32>
    %43 = vector.shape_cast %42 : vector<128xf32> to vector<128x1xf32>
    %cst_19 = arith.constant 1.000000e+00 : f32
    %44 = vector.broadcast %cst_19 : f32 to vector<128x1xf32>
    %45 = arith.subf %43, %44 : vector<128x1xf32>
    %cst_20 = arith.constant 0.000000e+00 : f32
    %46 = vector.broadcast %cst_20 : f32 to vector<128x128xf32>
    %47 = arith.select %19, %27, %46 : vector<128x128xi1>, vector<128x128xf32>
    %cst_21 = arith.constant dense<0.000000e+00> : vector<128xf32>
    %48 = vector.multi_reduction <add>, %47, %cst_21 [1] : vector<128x128xf32> to vector<128xf32>
    %49 = vector.shape_cast %48 : vector<128xf32> to vector<128x1xf32>
    %50 = arith.subf %49, %38 : vector<128x1xf32>
    %cst_22 = arith.constant 1.000000e+00 : f32
    %51 = vector.broadcast %cst_22 : f32 to vector<128x1xf32>
    %52 = arith.maximumf %45, %51 : vector<128x1xf32>
    %53 = arith.divf %50, %52 : vector<128x1xf32>
    %cst_23 = arith.constant 0.000000e+00 : f32
    %54 = vector.broadcast %cst_23 : f32 to vector<128x1xf32>
    %55 = arith.cmpf ogt, %5, %54 : vector<128x1xf32>
    %cst_24 = arith.constant -1.42857146 : f32
    %56 = vector.broadcast %cst_24 : f32 to vector<128x1xf32>
    %57 = arith.mulf %56, %53 : vector<128x1xf32>
    %58 = arith.mulf %57, %5 : vector<128x1xf32>
    %cst_25 = arith.constant 0.000000e+00 : f32
    %59 = vector.broadcast %cst_25 : f32 to vector<128x1xf32>
    %60 = arith.select %55, %58, %59 : vector<128x1xi1>, vector<128x1xf32>
    %cst_26 = arith.constant dense<0.000000e+00> : vector<1xf32>
    %61 = vector.multi_reduction <add>, %60, %cst_26 [0] : vector<128x1xf32> to vector<1xf32>
    %62 = vector.shape_cast %61 : vector<1xf32> to vector<1x1xf32>
    %cst_27 = arith.constant dense<0.000000e+00> : vector<1xf32>
    %63 = vector.multi_reduction <add>, %5, %cst_27 [0] : vector<128x1xf32> to vector<1xf32>
    %64 = vector.shape_cast %63 : vector<1xf32> to vector<1x1xf32>
    %65 = tpu.iota {dimensions = array<i32: 1>} : vector<1x8x128xi32>
    %c0_i32 = arith.constant 0 : i32
    %66 = vector.broadcast %c0_i32 : i32 to vector<1x8x128xi32>
    %67 = arith.cmpi eq, %65, %66 : vector<1x8x128xi32>
    %68 = vector.shape_cast %62 : vector<1x1xf32> to vector<1x1x1xf32>
    %69 = vector.shape_cast %68 : vector<1x1x1xf32> to vector<1x1x1xf32>
    %70 = vector.broadcast %69 : vector<1x1x1xf32> to vector<1x8x128xf32>
    %71 = vector.shape_cast %64 : vector<1x1xf32> to vector<1x1x1xf32>
    %72 = vector.shape_cast %71 : vector<1x1x1xf32> to vector<1x1x1xf32>
    %73 = vector.broadcast %72 : vector<1x1x1xf32> to vector<1x8x128xf32>
    %74 = arith.select %67, %70, %73 : vector<1x8x128xi1>, vector<1x8x128xf32>
    %c0_28 = arith.constant 0 : index
    %c0_29 = arith.constant 0 : index
    %c0_30 = arith.constant 0 : index
    %75 = vector.load %arg6[%c0_28, %c0_29, %c0_30] : memref<1x8x128xf32, #tpu.memory_space<vmem>>, vector<1x8x128xf32>
    tpu.vector_store %arg6[%c0_28, %c0_29, %c0_30], %74 {strides = array<i32>} : memref<1x8x128xf32, #tpu.memory_space<vmem>>, vector<1x8x128xf32>,
    return
  }
  func.func @transform_0(%arg0: i32) -> (i32, i32) {
    %c0_i32 = arith.constant 0 : i32
    %c0_i32_0 = arith.constant 0 : i32
    return %arg0, %c0_i32 : i32, i32
  }
  func.func @transform_1(%arg0: i32) -> (i32, i32) {
    %c0_i32 = arith.constant 0 : i32
    %c0_i32_0 = arith.constant 0 : i32
    %c0_i32_1 = arith.constant 0 : i32
    return %c0_i32, %c0_i32_0 : i32, i32
  }
  func.func @transform_2(%arg0: i32) -> (i32, i32) {
    %c0_i32 = arith.constant 0 : i32
    %c0_i32_0 = arith.constant 0 : i32
    %c0_i32_1 = arith.constant 0 : i32
    return %c0_i32, %c0_i32_0 : i32, i32
  }
  func.func @transform_3(%arg0: i32) -> (i32, i32) {
    %c0_i32 = arith.constant 0 : i32
    %c0_i32_0 = arith.constant 0 : i32
    return %arg0, %c0_i32 : i32, i32
  }
  func.func @transform_4(%arg0: i32) -> (i32, i32) {
    %c0_i32 = arith.constant 0 : i32
    %c0_i32_0 = arith.constant 0 : i32
    return %arg0, %c0_i32 : i32, i32
  }
  func.func @transform_5(%arg0: i32) -> (i32, i32, i32) {
    %c0_i32 = arith.constant 0 : i32
    %c0_i32_0 = arith.constant 0 : i32
    %c0_i32_1 = arith.constant 0 : i32
    return %arg0, %c0_i32, %c0_i32_0 : i32, i32, i32
  }
}

</mosaic_0001>

<bundles_post_ra>
// kernel: tile.8
= control target key start
LH: loop header
LB: loop body
LE: loop exit
PB: predicated region body
PF: predicated region fallthrough
CT: control target
= control target key end

     0   :  { %s28_s0 = inlined_call_operand.vmem [shape: f32[6], index: 0, kind: input, shape index: {}]   ;;  %s29_s1 = inlined_call_operand.vmem [shape: f32[10,6], index: 1, kind: output, shape index: {}]  }
   0x1   :  { %v4_v0 = vld [vmem:[%s28_s0] ss:$0 sm:$0xff] }
   0x2   :  { %5 = vst [vmem:[%s29_s1] sm:$0xff] %v4_v0  ;;  %8 = vst [vmem:[%s29_s1 + $0x8] sm:$0xff] %v4_v0 }

// kernel: _contrastive_loss_jit.1
= control target key start
LH: loop header
LB: loop body
LE: loop exit
PB: predicated region body
PF: predicated region fallthrough
CT: control target
= control target key end

     0   :  { %v1406_v1 = vmov 0   ;;  %v281_v3 = vlaneseq  ;;  %s2467_s1 = inlined_call_operand.vmem [shape: bf16[128,128], index: 1, kind: input, shape index: {}]   ;;  %s2468_s0 = inlined_call_operand.vmem [shape: bf16[128,128], index: 0, kind: input, shape index: {}]   ;;  %s2469_s2 = inlined_call_operand.vmem [shape: f32[1,128], index: 2, kind: input, shape index: {}]   ;;  %s2470_s3 = inlined_call_operand.vmem [shape: f32[128,1], index: 3, kind: input, shape index: {}]   ;;  %s2471_s4 = inlined_call_operand.vmem [shape: f32[128,1], index: 4, kind: input, shape index: {}]   ;;  %s2472_s5 = inlined_call_operand.vmem [shape: f32[1,8,128], index: 5, kind: output, shape index: {}]  }
   0x1   :  { %v1222_v0 = vld [vmem:[%s2467_s1 + $0x38] sm:$0xff]   ;;  %1221 = vset.pattern.permute.xlu1 %v1406_v1  ;;  %1220 = vset.pattern.permute.xlu0 %v1406_v1  ;;  %v1223_v2 = vld [vmem:[%s2467_s1 + $0x30] sm:$0xff]   ;;  %v1224_v4 = vld [vmem:[%s2467_s1 + $0x28] sm:$0xff]  }
   0x2   :  { %1170 = vmatprep.subr.bf16.mxu0 %v1222_v0  ;;  %1202 = vmatprep.subr.bf16.mxu1 %v1222_v0  ;;  %v1449_v5 = vshrl.u32 %v281_v3, 7  ;;  %v1225_v6 = vld [vmem:[%s2467_s1 + $0x20] sm:$0xff]   ;;  %v248_v12 = vld [vmem:[%s2470_s3 + $0x8] sm:$0xff]  ;;  %v1226_v13 = vld [vmem:[%s2467_s1 + $0x18] sm:$0xff]  }
   0x3   :  { %1171 = vmatpush3.bf16.msra.mxu0 %v1222_v0  ;;  %1210 = vmatpush3.bf16.msra.mxu1 %v1222_v0  ;;  %v1457_v7 = vld [vmem:[%s2468_s0] sm:$0xff]   ;;  %v250_v15 = vld [vmem:[%s2470_s3 + $0x18] sm:$0xff]  ;;  %v249_v16 = vld [vmem:[%s2470_s3 + $0x10] sm:$0xff] }
   0x4   :  { %1172 = vmatprep.subr.bf16.mxu0 %v1223_v2  ;;  %1203 = vmatprep.subr.bf16.mxu1 %v1223_v2  ;;  %2514 = vst [vmem:[#allocation2_spill] sm:$0xff] %v1449_v5  ;;  %v1462_v8 = vld [vmem:[%s2468_s0 + $0x20] sm:$0xff]   ;;  %v283_v9 = vsub.s32 0, %v1449_v5  ;;  %v1227_v17 = vld [vmem:[%s2467_s1 + $0x10] sm:$0xff]   ;;  %v1228_v19 = vld [vmem:[%s2467_s1 + $0x8] sm:$0xff]  }
   0x5   :  { %v246_v10 = vld [vmem:[%s2469_s2] sm:$0x1]  ;;  %1186 = vmatprep.mubr.bf16.mxu0 %v1457_v7  ;;  %1194 = vmatprep.mubr.bf16.mxu1 %v1462_v8  ;;  %v252_v20 = vld [vmem:[%s2470_s3 + $0x28] sm:$0xff]  ;;  %v253_v24 = vld [vmem:[%s2470_s3 + $0x30] sm:$0xff] }
   0x6   :  { %v1468_v11 = vrot.slane %v246_v10, %v283_v9  ;;  %v247_v14 = vld [vmem:[%s2470_s3] sm:$0xff]  ;;  %389 = vperm.xlu1 %1221, %v248_v12   ;;  %v1505_v22 = vld [vmem:[%s2468_s0 + $0x8] sm:$0xff]   ;;  %v1518_v25 = vld [vmem:[%s2468_s0 + $0x30] sm:$0xff]   ;;  %vm279_vm0 = vcmp.ge.f32.partialorder %v246_v10, 0.0 }
   0x7   :  { %1173 = vmatpush3.bf16.msra.mxu0 %v1223_v2  ;;  %1211 = vmatpush3.bf16.msra.mxu1 %v1223_v2  ;;  %v251_v18 = vld [vmem:[%s2470_s3 + $0x20] sm:$0xff]  ;;  %v1510_v23 = vld [vmem:[%s2468_s0 + $0x28] sm:$0xff]   ;;  %v1523_v26 = vld [vmem:[%s2468_s0 + $0x10] sm:$0xff]   ;;  %v280_v29 = vsel %vm279_vm0, 1, %v1406_v1 }
   0x8   :  { %1174 = vmatprep.subr.bf16.mxu0 %v1224_v4  ;;  %1204 = vmatprep.subr.bf16.mxu1 %v1224_v4  ;;  %v1229_v21 = vld [vmem:[%s2467_s1] sm:$0xff]   ;;  %v1531_v27 = vld [vmem:[%s2468_s0 + $0x38] sm:$0xff]   ;;  %v1542_v30 = vrot.slane %v280_v29, %v283_v9  ;;  %v256_v54 = vld [vmem:[%s2470_s3 + $0x48] sm:$0xff] }
   0x9   :  { %384 = vperm.xlu0 %1220, %v247_v14   ;;  %v1537_v28 = vld [vmem:[%s2468_s0 + $0x18] sm:$0xff]   ;;  %v255_v53 = vld [vmem:[%s2470_s3 + $0x40] sm:$0xff]  ;;  %v257_v55 = vld [vmem:[%s2470_s3 + $0x50] sm:$0xff] }
   0xa   :  { %399 = vperm.xlu1 %1221, %v250_v15   ;;  %vm285_vm1 = vcmp.eq.s32.totalorder %v1542_v30, 1  ;;  %v254_v56 = vld [vmem:[%s2470_s3 + $0x38] sm:$0xff]  ;;  %v260_v2 = vld [vmem:[%s2470_s3 + $0x68] sm:$0xff]  ;;  %v259_v3 = vld [vmem:[%s2470_s3 + $0x60] sm:$0xff] }
   0xb   :  { %1175 = vmatpush3.bf16.msra.mxu0 %v1224_v4  ;;  %1212 = vmatpush3.bf16.msra.mxu1 %v1224_v4  ;;  %v258_v57 = vld [vmem:[%s2470_s3 + $0x58] sm:$0xff] }
   0xc   :  { %1176 = vmatprep.subr.bf16.mxu0 %v1225_v6  ;;  %1205 = vmatprep.subr.bf16.mxu1 %v1225_v6  ;;  %v262_v4 = vld [vmem:[%s2470_s3 + $0x78] sm:$0xff] }
   0xd   :  { %394 = vperm.xlu0 %1220, %v249_v16  }
   0xe   :  { %404 = vperm.xlu1 %1221, %v251_v18  }
   0xf   :  { %1177 = vmatpush3.bf16.msra.mxu0 %v1225_v6  ;;  %1213 = vmatpush3.bf16.msra.mxu1 %v1225_v6 }
  0x10   :  { %1178 = vmatprep.subr.bf16.mxu0 %v1226_v13  ;;  %1206 = vmatprep.subr.bf16.mxu1 %v1226_v13 }
  0x12   :  { %409 = vperm.xlu1 %1221, %v252_v20  }
  0x13   :  { %1179 = vmatpush3.bf16.msra.mxu0 %v1226_v13  ;;  %1214 = vmatpush3.bf16.msra.mxu1 %v1226_v13 }
  0x14   :  { %1180 = vmatprep.subr.bf16.mxu0 %v1227_v17  ;;  %1207 = vmatprep.subr.bf16.mxu1 %v1227_v17 }
  0x16   :  { %414 = vperm.xlu1 %1221, %v253_v24  }
  0x17   :  { %1181 = vmatpush3.bf16.msra.mxu0 %v1227_v17  ;;  %1215 = vmatpush3.bf16.msra.mxu1 %v1227_v17 }
  0x18   :  { %1182 = vmatprep.subr.bf16.mxu0 %v1228_v19  ;;  %1208 = vmatprep.subr.bf16.mxu1 %v1228_v19 }
  0x1b   :  { %1183 = vmatpush3.bf16.msra.mxu0 %v1228_v19  ;;  %1216 = vmatpush3.bf16.msra.mxu1 %v1228_v19 }
  0x1c   :  { %1184 = vmatprep.subr.bf16.mxu0 %v1229_v21  ;;  %1209 = vmatprep.subr.bf16.mxu1 %v1229_v21 }
  0x1f   :  { %1185 = vmatpush3.bf16.msra.mxu0 %v1229_v21  ;;  %1217 = vmatpush3.bf16.msra.mxu1 %v1229_v21 }
  0x22   :  { %1187 = vmatmul.mubr.bf16.vlgmr.msra.gmra.mxu0 %v1505_v22  ;;  %1195 = vmatmul.mubr.bf16.vlgmr.msra.gmra.mxu1 %v1510_v23 }
  0x23   :  { %1198 = vmatprep.mubr.bf16.mxu1 %v1518_v25  ;;  %1190 = vmatprep.mubr.bf16.mxu0 %v1523_v26 }
  0x2a   :  { %1199 = vmatmul.mubr.bf16.gmra.mxu1 %v1531_v27  ;;  %1191 = vmatmul.mubr.bf16.gmra.mxu0 %v1537_v28 }
  0x81   :  { %v1638_v6 = vpop.permute.xlu1 %389 }
  0x82   :  { %vm469_vm3 = vcmp.eq.f32.partialorder %v1638_v6, %v1468_v11 }
  0x84   :  { %v1644_v12 = vpop.permute.xlu0 %384 }
  0x85   :  { %v1640_v9 = vpop.permute.xlu1 %399  ;;  %vm468_vm8 = vcmp.eq.f32.partialorder %v1644_v12, %v1468_v11 }
  0x86   :  { %vm471_vm9 = vcmp.eq.f32.partialorder %v1640_v9, %v1468_v11 }
  0x88   :  { %v1648_v14 = vpop.permute.xlu0 %394 }
  0x89   :  { %v1642_v10 = vpop.permute.xlu1 %404  ;;  %vm470_vm2 = vcmp.eq.f32.partialorder %v1648_v14, %v1468_v11 }
  0x8a   :  { %vm472_vm5 = vcmp.eq.f32.partialorder %v1642_v10, %v1468_v11 }
  0x8d   :  { %v1646_v13 = vpop.permute.xlu1 %409 }
  0x8e   :  { %vm473_vm12 = vcmp.eq.f32.partialorder %v1646_v13, %v1468_v11 }
  0x91   :  { %v1650_v15 = vpop.permute.xlu1 %414 }
  0x92   :  { %vm474_vm4 = vcmp.eq.f32.partialorder %v1650_v15, %v1468_v11 }
  0xe2   :  { %v1188_v31 = vpop.f32.mrf.mxu0  ;;  %v1196_v32 = vpop.f32.mrf.mxu1 }
  0xe3   :  { %v1547_v33 = vsel %vm285_vm1, %v1196_v32, -1e+30  ;;  %v1551_v34 = vsel %vm285_vm1, %v1188_v31, -1e+30 }
  0xe4   :  { %322 = vmax.xlane.f32.xlu0 %v1547_v33  ;;  %v215_v35 = vpop.f32.mrf.mxu1  ;;  %306 = vmax.xlane.f32.xlu1 %v1551_v34  ;;  %v183_v36 = vpop.f32.mrf.mxu0 }
  0xe5   :  { %v1557_v38 = vsel %vm285_vm1, %v183_v36, -1e+30  ;;  %v1567_v41 = vsel %vm285_vm1, %v215_v35, -1e+30  ;;  %v261_v36 = vld [vmem:[%s2470_s3 + $0x70] sm:$0xff] }
  0xe6   :  { %v1189_v37 = vpop.f32.mrf.mxu0  ;;  %v1197_v40 = vpop.f32.mrf.mxu1 }
  0xe7   :  { %v1561_v39 = vsel %vm285_vm1, %v1189_v37, -1e+30  ;;  %v1571_v42 = vsel %vm285_vm1, %v1197_v40, -1e+30 }
  0xe8   :  { %302 = vmax.xlane.f32.xlu0 %v1557_v38  ;;  %308 = vmax.xlane.f32.xlu1 %v1561_v39  ;;  %v218_v43 = vpop.f32.mrf.mxu1  ;;  %v186_v44 = vpop.f32.mrf.mxu0 }
  0xe9   :  { %v1577_v46 = vsel %vm285_vm1, %v218_v43, -1e+30  ;;  %v287_v47 = vsel %vm285_vm1, %v186_v44, -1e+30 }
  0xea   :  { %v1192_v45 = vpop.f32.mrf.mxu0  ;;  %v1200_v48 = vpop.f32.mrf.mxu1 }
  0xeb   :  { %v1584_v49 = vsel %vm285_vm1, %v1200_v48, -1e+30  ;;  %v292_v50 = vsel %vm285_vm1, %v1192_v45, -1e+30 }
  0xec   :  { %318 = vmax.xlane.f32.xlu0 %v1567_v41  ;;  %324 = vmax.xlane.f32.xlu1 %v1571_v42  ;;  %v199_v51 = vpop.f32.mrf.mxu0  ;;  %v231_v58 = vpop.f32.mrf.mxu1 }
  0xed   :  { %v1591_v52 = vsel %vm285_vm1, %v199_v51, -1e+30  ;;  %v1611_v59 = vsel %vm285_vm1, %v231_v58, -1e+30 }
  0xee   :  { %v1201_v60 = vpop.f32.mrf.mxu1  ;;  %v1193_v62 = vpop.f32.mrf.mxu0 }
  0xef   :  { %v1616_v61 = vsel %vm285_vm1, %v1201_v60, -1e+30  ;;  %v1621_v63 = vsel %vm285_vm1, %v1193_v62, -1e+30 }
  0xf0   :  { %320 = vmax.xlane.f32.xlu1 %v1577_v46  ;;  %304 = vmax.xlane.f32.xlu0 %v287_v47  ;;  %v202_v0 = vpop.f32.mrf.mxu0  ;;  %v234_v16 = vpop.f32.mrf.mxu1 }
  0xf1   :  { %v1626_v1 = vsel %vm285_vm1, %v202_v0, -1e+30  ;;  %v1658_v19 = vsel %vm285_vm1, %v234_v16, -1e+30 }
  0xf4   :  { %330 = vmax.xlane.f32.xlu1 %v1584_v49  ;;  %314 = vmax.xlane.f32.xlu0 %v292_v50 }
  0xf8   :  { %310 = vmax.xlane.f32.xlu0 %v1591_v52 }
 0x105   :  { %424 = vperm.xlu1 %1221, %v255_v53  }
 0x109   :  { %429 = vperm.xlu1 %1221, %v256_v54  }
 0x10d   :  { %434 = vperm.xlu1 %1221, %v257_v55  }
 0x10e   :  { %419 = vperm.xlu0 %1220, %v254_v56  }
 0x111   :  { %439 = vperm.xlu1 %1221, %v258_v57  }
 0x12d   :  { %326 = vmax.xlane.f32.xlu0 %v1611_v59 }
 0x131   :  { %332 = vmax.xlane.f32.xlu0 %v1616_v61 }
 0x135   :  { %316 = vmax.xlane.f32.xlu1 %v1621_v63 }
 0x139   :  { %312 = vmax.xlane.f32.xlu1 %v1626_v1 }
 0x147   :  { %449 = vperm.xlu0 %1220, %v260_v2  }
 0x14a   :  { %444 = vperm.xlu1 %1221, %v259_v3  }
 0x14b   :  { %459 = vperm.xlu0 %1220, %v262_v4  }
 0x16d   :  { %v1652_v17 = vpop.xlane.xlu0 %322  ;;  %v1654_v18 = vpop.xlane.xlu1 %306 }
 0x16e   :  { %2515 = vst [vmem:[#allocation3_spill] sm:$0xff] %v1652_v17  ;;  %2516 = vst [vmem:[#allocation4_spill] sm:$0xff] %v1654_v18  ;;  %v1662_v20 = vsub.f32 %v1551_v34, %v1654_v18  ;;  %328 = vmax.xlane.f32.xlu1 %v1658_v19  ;;  %v596_v18 = vunpack.c.l.bf16 %v1457_v7 }
 0x170   :  { %v354_v21 = vmul.f32 1.442695, %v1662_v20 }
 0x171   :  { %v1666_v24 = vpop.xlane.xlu0 %302  ;;  %v1668_v29 = vpop.xlane.xlu1 %308 }
 0x172   :  { %2517 = vst [vmem:[#allocation5_spill] sm:$0xff] %v1666_v24  ;;  %1246 = vpow2.f32 %v354_v21  ;;  %2518 = vst [vmem:[#allocation6_spill] sm:$0xff] %v1668_v29  ;;  %v1719_v56 = vsub.f32 %v1557_v38, %v1666_v24  ;;  %v1735_v38 = vsub.f32 %v1561_v39, %v1668_v29 }
 0x174   :  { %v350_v60 = vmul.f32 1.442695, %v1719_v56  ;;  %v356_v3 = vmul.f32 1.442695, %v1735_v38 }
 0x175   :  { %v1670_v31 = vpop.xlane.xlu0 %318  ;;  %v1672_v32 = vpop.xlane.xlu1 %324 }
 0x176   :  { %2519 = vst [vmem:[#allocation7_spill] sm:$0xff] %v1670_v31  ;;  %2520 = vst [vmem:[#allocation8_spill] sm:$0xff] %v1672_v32 }
 0x179   :  { %v1674_v30 = vpop.xlane.xlu0 %304  ;;  %v1688_v43 = vpop.xlane.xlu1 %320 }
 0x17a   :  { %2521 = vst [vmem:[#allocation9_spill] sm:$0xff] %v1674_v30  ;;  %v1677_v35 = vsub.f32 %v287_v47, %v1674_v30  ;;  %2523 = vst [vmem:[#allocation11_spill] sm:$0xff] %v1688_v43  ;;  %v1697_v47 = vsub.f32 %v1567_v41, %v1670_v31  ;;  %v1715_v41 = vsub.f32 %v1547_v33, %v1652_v17 }
 0x17c   :  { %v352_v34 = vmul.f32 1.442695, %v1677_v35  ;;  %v366_v54 = vmul.f32 1.442695, %v1697_v47 }
 0x17d   :  { %v1683_v37 = vpop.xlane.xlu0 %314  ;;  %v1711_v55 = vpop.xlane.xlu1 %330 }
 0x17e   :  { %2522 = vst [vmem:[#allocation10_spill] sm:$0xff] %v1683_v37  ;;  %v1686_v40 = vsub.f32 %v292_v50, %v1683_v37  ;;  %1248 = vpow2.f32 %v352_v34  ;;  %2525 = vst [vmem:[#allocation13_spill] sm:$0xff] %v1711_v55  ;;  %v1888_v37 = vsub.f32 %v1584_v49, %v1711_v55  ;;  %v612_v49 = vmul.f32 %v596_v18, %v596_v18 }
 0x17f   :  { %454 = vperm.xlu1 %1221, %v261_v36   ;;  %v1690_v44 = vpop.eup %1246  ;;  %v600_v55 = vunpack.c.l.bf16 %v1523_v26 }
 0x180   :  { %v362_v45 = vmul.f32 1.442695, %v1686_v40  ;;  %v486_v48 = vsel %vm470_vm2, 0.0, %v1690_v44  ;;  %2532 = vst [vmem:[#allocation20_spill] sm:$0xff] %v1888_v37 }
 0x181   :  { %v1703_v50 = vpop.xlane.xlu0 %310  ;;  %504 = vadd.xlane.f32.xlu0 %v486_v48  ;;  %v1722_v57 = vpop.permute.xlu1 %424  ;;  %v616_v30 = vmul.f32 %v600_v55, %v600_v55  ;;  %v599_v55 = vunpack.c.h.bf16 %v1505_v22 }
 0x182   :  { %2524 = vst [vmem:[#allocation12_spill] sm:$0xff] %v1703_v50  ;;  %v1707_v51 = vsub.f32 %v1591_v52, %v1703_v50  ;;  %1250 = vpow2.f32 %v362_v45  ;;  %v370_v52 = vmul.f32 1.442695, %v1715_v41  ;;  %vm476_vm6 = vcmp.eq.f32.partialorder %v1722_v57, %v1468_v11 }
 0x184   :  { %v358_v53 = vmul.f32 1.442695, %v1707_v51 }
 0x185   :  { %v1741_v0 = vpop.permute.xlu1 %429 }
 0x186   :  { %1252 = vpow2.f32 %v358_v53  ;;  %vm477_vm13 = vcmp.eq.f32.partialorder %v1741_v0, %v1468_v11 }
 0x187   :  { %1254 = vpow2.f32 %v366_v54 }
 0x188   :  { %1256 = vpow2.f32 %v370_v52 }
 0x189   :  { %1258 = vpow2.f32 %v350_v60  ;;  %v1758_v21 = vpop.permute.xlu1 %434 }
 0x18a   :  { %1260 = vpow2.f32 %v356_v3  ;;  %vm478_vm7 = vcmp.eq.f32.partialorder %v1758_v21, %v1468_v11 }
 0x18b   :  { %v1724_v58 = vpop.eup %1248 }
 0x18c   :  { %v485_v33 = vsel %vm469_vm3, 0.0, %v1724_v58 }
 0x18d   :  { %502 = vadd.xlane.f32.xlu0 %v485_v33  ;;  %v1790_v33 = vpop.permute.xlu0 %419 }
 0x18e   :  { %vm475_vm11 = vcmp.eq.f32.partialorder %v1790_v33, %v1468_v11 }
 0x18f   :  { %v1737_v62 = vpop.eup %1250 }
 0x190   :  { %v490_v2 = vsel %vm474_vm4, 0.0, %v1737_v62 }
 0x191   :  { %512 = vadd.xlane.f32.xlu0 %v490_v2 }
 0x193   :  { %v1748_v39 = vpop.eup %1252 }
 0x194   :  { %v488_v4 = vsel %vm472_vm5, 0.0, %v1748_v39  ;;  %v1756_v16 = vpop.eup %1254 }
 0x195   :  { %508 = vadd.xlane.f32.xlu0 %v488_v4  ;;  %v492_v34 = vsel %vm476_vm6, 0.0, %v1756_v16  ;;  %v1768_v36 = vpop.eup %1256  ;;  %v1799_v4 = vpop.permute.xlu1 %439 }
 0x196   :  { %v494_v45 = vsel %vm478_vm7, 0.0, %v1768_v36  ;;  %v1774_v48 = vpop.eup %1258  ;;  %vm479_vm14 = vcmp.eq.f32.partialorder %v1799_v4, %v1468_v11 }
 0x197   :  { %v484_v53 = vsel %vm468_vm8, 0.0, %v1774_v48  ;;  %v1782_v54 = vpop.eup %1260 }
 0x198   :  { %v487_v52 = vsel %vm471_vm9, 0.0, %v1782_v54 }
 0x199   :  { %516 = vadd.xlane.f32.xlu0 %v492_v34 }
 0x19d   :  { %520 = vadd.xlane.f32.xlu0 %v494_v45 }
 0x1a3   :  { %500 = vadd.xlane.f32.xlu1 %v484_v53  ;;  %v1809_v53 = vsub.f32 %v1577_v46, %v1688_v43  ;;  %v1826_v46 = vsub.f32 %v1571_v42, %v1672_v32 }
 0x1a5   :  { %v372_v42 = vmul.f32 1.442695, %v1826_v46 }
 0x1a7   :  { %506 = vadd.xlane.f32.xlu1 %v487_v52 }
 0x1b6   :  { %v1792_v60 = vpop.xlane.xlu0 %326 }
 0x1b7   :  { %2526 = vst [vmem:[#allocation14_spill] sm:$0xff] %v1792_v60  ;;  %v1796_v2 = vsub.f32 %v1611_v59, %v1792_v60 }
 0x1b9   :  { %v374_v3 = vmul.f32 1.442695, %v1796_v2 }
 0x1ba   :  { %v1820_v17 = vpop.xlane.xlu0 %332 }
 0x1bb   :  { %1262 = vpow2.f32 %v374_v3  ;;  %v368_v3 = vmul.f32 1.442695, %v1809_v53  ;;  %2529 = vst [vmem:[#allocation17_spill] sm:$0xff] %v1820_v17 }
 0x1be   :  { %v1801_v34 = vpop.xlane.xlu1 %316 }
 0x1bf   :  { %2527 = vst [vmem:[#allocation15_spill] sm:$0xff] %v1801_v34  ;;  %v1805_v45 = vsub.f32 %v1621_v63, %v1801_v34 }
 0x1c1   :  { %v364_v52 = vmul.f32 1.442695, %v1805_v45 }
 0x1c2   :  { %v1812_v5 = vpop.xlane.xlu1 %312 }
 0x1c3   :  { %2528 = vst [vmem:[#allocation16_spill] sm:$0xff] %v1812_v5  ;;  %1264 = vpow2.f32 %v364_v52  ;;  %v1816_v59 = vsub.f32 %v1626_v1, %v1812_v5  ;;  %v1834_v1 = vsub.f32 %v1616_v61, %v1820_v17  ;;  %v378_v5 = vmul.f32 1.442695, %v1888_v37 }
 0x1c4   :  { %v615_v37 = vmul.f32 %v599_v55, %v599_v55  ;;  %v1407_v55 = vmov 0.0  }
 0x1c5   :  { %v360_v60 = vmul.f32 1.442695, %v1816_v59  ;;  %2530 = vst [vmem:[#allocation18_spill] sm:$0xff] %v1834_v1 }
 0x1c6   :  { %v1822_v63 = vpop.permute.xlu1 %444 }
 0x1c7   :  { %1266 = vpow2.f32 %v360_v60  ;;  %vm480_vm10 = vcmp.eq.f32.partialorder %v1822_v63, %v1468_v11  ;;  %v380_v60 = vmul.f32 1.442695, %v1834_v1  ;;  %v597_v1 = vunpack.c.h.bf16 %v1457_v7  ;;  %v2108_v63 = vld [vmem:[%s2471_s4 + $0x18] sm:$0xff] }
 0x1c8   :  { %v1830_v52 = vpop.eup %1262  ;;  %1268 = vpow2.f32 %v368_v3 }
 0x1c9   :  { %v496_v43 = vsel %vm480_vm10, 0.0, %v1830_v52  ;;  %1270 = vpow2.f32 %v372_v42 }
 0x1ca   :  { %524 = vadd.xlane.f32.xlu0 %v496_v43  ;;  %1272 = vpow2.f32 %v380_v60  ;;  %v1860_v60 = vpop.permute.xlu0 %449 }
 0x1cb   :  { %1274 = vpow2.f32 %v378_v5  ;;  %vm481_vm1 = vcmp.eq.f32.partialorder %v1860_v60, %v1468_v11 }
 0x1ce   :  { %v1872_v31 = vpop.permute.xlu0 %459 }
 0x1cf   :  { %vm483_vm15 = vcmp.eq.f32.partialorder %v1872_v31, %v1468_v11 }
 0x1d0   :  { %v1842_v32 = vpop.eup %1264 }
 0x1d1   :  { %v491_v61 = vsel %vm475_vm11, 0.0, %v1842_v32 }
 0x1d2   :  { %514 = vadd.xlane.f32.xlu1 %v491_v61 }
 0x1d4   :  { %v1850_v3 = vpop.eup %1266 }
 0x1d5   :  { %v489_v43 = vsel %vm473_vm12, 0.0, %v1850_v3  ;;  %v1858_v42 = vpop.eup %1268 }
 0x1d6   :  { %510 = vadd.xlane.f32.xlu1 %v489_v43  ;;  %v493_v61 = vsel %vm477_vm13, 0.0, %v1858_v42  ;;  %v1870_v17 = vpop.eup %1270 }
 0x1d7   :  { %v495_v43 = vsel %vm479_vm14, 0.0, %v1870_v17  ;;  %v1878_v34 = vpop.eup %1272 }
 0x1d8   :  { %2531 = vst [vmem:[#allocation19_spill] sm:$0xff] %v1878_v34 }
 0x1da   :  { %518 = vadd.xlane.f32.xlu1 %v493_v61  ;;  %v499_v61 = vsel %vm483_vm15, 0.0, %v1878_v34 }
 0x1de   :  { %522 = vadd.xlane.f32.xlu1 %v495_v43 }
 0x1e2   :  { %530 = vadd.xlane.f32.xlu1 %v499_v61  ;;  %v1901_v61 = vpop.eup %1274 }
 0x1e3   :  { %2535 = vst [vmem:[#allocation23_spill] sm:$0xff] %v1901_v61 }
 0x1f7   :  { %v1891_v50 = vpop.xlane.xlu1 %328 }
 0x1f8   :  { %2533 = vst [vmem:[#allocation21_spill] sm:$0xff] %v1891_v50  ;;  %v1895_v43 = vsub.f32 %v1658_v19, %v1891_v50  ;;  %v598_v19 = vunpack.c.l.bf16 %v1505_v22 }
 0x1fa   :  { %2534 = vst [vmem:[#allocation22_spill] sm:$0xff] %v1895_v43  ;;  %v376_v29 = vmul.f32 1.442695, %v1895_v43  ;;  %v614_v50 = vmul.f32 %v598_v19, %v598_v19  ;;  %v606_v19 = vunpack.c.l.bf16 %v1510_v23 }
 0x1fb   :  { %v1899_v24 = vpop.permute.xlu1 %454 }
 0x1fc   :  { %1276 = vpow2.f32 %v376_v29  ;;  %vm482_vm0 = vcmp.eq.f32.partialorder %v1899_v24, %v1468_v11  ;;  %v602_v29 = vunpack.c.l.bf16 %v1537_v28  ;;  %v622_v34 = vmul.f32 %v606_v19, %v606_v19 }
 0x1fd   :  { %v498_v5 = vsel %vm482_vm0, 0.0, %v1901_v61  ;;  %v608_v61 = vunpack.c.l.bf16 %v1518_v25 }
 0x1fe   :  { %528 = vadd.xlane.f32.xlu0 %v498_v5  ;;  %v618_v5 = vmul.f32 %v602_v29, %v602_v29 }
 0x202   :  { %628 = vadd.xlane.f32.xlu0 %v612_v49  ;;  %v604_v49 = vunpack.c.l.bf16 %v1462_v8 }
 0x204   :  { %v620_v7 = vmul.f32 %v604_v49, %v604_v49  ;;  %v610_v49 = vunpack.c.l.bf16 %v1531_v27 }
 0x206   :  { %632 = vadd.xlane.f32.xlu0 %v614_v50  ;;  %v613_v50 = vmul.f32 %v597_v1, %v597_v1  ;;  %v624_v1 = vmul.f32 %v608_v61, %v608_v61  ;;  %v609_v61 = vunpack.c.h.bf16 %v1518_v25  ;;  %v789_v25 = vsel %vm469_vm3, 1.0, %v1407_v55 }
 0x209   :  { %v1913_v43 = vpop.eup %1276 }
 0x20a   :  { %2536 = vst [vmem:[#allocation24_spill] sm:$0xff] %v1913_v43  ;;  %636 = vadd.xlane.f32.xlu0 %v616_v30  ;;  %v497_v18 = vsel %vm481_vm1, 0.0, %v1913_v43  ;;  %v601_v30 = vunpack.c.h.bf16 %v1523_v26  ;;  %v603_v43 = vunpack.c.h.bf16 %v1537_v28  ;;  %v788_v28 = vsel %vm468_vm8, 1.0, %v1407_v55 }
 0x20b   :  { %526 = vadd.xlane.f32.xlu1 %v497_v18  ;;  %v605_v18 = vunpack.c.h.bf16 %v1462_v8  ;;  %v611_v8 = vunpack.c.h.bf16 %v1531_v27  ;;  %v792_v27 = vsel %vm472_vm5, 1.0, %v1407_v55 }
 0x20c   :  { %v617_v29 = vmul.f32 %v601_v30, %v601_v30  ;;  %v619_v22 = vmul.f32 %v603_v43, %v603_v43 }
 0x20d   :  { %v621_v26 = vmul.f32 %v605_v18, %v605_v18 }
 0x20e   :  { %640 = vadd.xlane.f32.xlu0 %v618_v5  ;;  %v1928_v5 = vpop.xlane.xlu0 %504 }
 0x20f   :  { %630 = vadd.xlane.f32.xlu1 %v613_v50  ;;  %v607_v50 = vunpack.c.h.bf16 %v1510_v23  ;;  %v625_v23 = vmul.f32 %v609_v61, %v609_v61  ;;  %v534_v30 = vadd.f32 %v1690_v44, %v1928_v5  ;;  %v793_v61 = vsel %vm473_vm12, 1.0, %v1407_v55 }
 0x211   :  { %v623_v43 = vmul.f32 %v607_v50, %v607_v50  ;;  %1278 = vlog2.f32 %v534_v30 }
 0x212   :  { %644 = vadd.xlane.f32.xlu0 %v620_v7  ;;  %v627_v7 = vmul.f32 %v611_v8, %v611_v8  ;;  %v798_v8 = vsel %vm478_vm7, 1.0, %v1407_v55 }
 0x213   :  { %634 = vadd.xlane.f32.xlu1 %v615_v37 }
 0x216   :  { %648 = vadd.xlane.f32.xlu0 %v622_v34  ;;  %v1936_v37 = vpop.xlane.xlu0 %502  ;;  %v626_v34 = vmul.f32 %v610_v49, %v610_v49  ;;  %v790_v49 = vsel %vm470_vm2, 1.0, %v1407_v55 }
 0x217   :  { %638 = vadd.xlane.f32.xlu1 %v617_v29  ;;  %v533_v18 = vadd.f32 %v1724_v58, %v1936_v37  ;;  %v796_v58 = vsel %vm476_vm6, 1.0, %v1407_v55 }
 0x21a   :  { %652 = vadd.xlane.f32.xlu0 %v624_v1  ;;  %v1940_v19 = vpop.xlane.xlu0 %512 }
 0x21b   :  { %642 = vadd.xlane.f32.xlu1 %v619_v22  ;;  %v794_v22 = vsel %vm474_vm4, 1.0, %v1407_v55 }
 0x21e   :  { %804 = vadd.xlane.f32.xlu0 %v788_v28  ;;  %v1948_v29 = vpop.xlane.xlu0 %508  ;;  %v538_v28 = vadd.f32 %v1737_v62, %v1940_v19 }
 0x21f   :  { %646 = vadd.xlane.f32.xlu1 %v621_v26  ;;  %v536_v62 = vadd.f32 %v1748_v39, %v1948_v29  ;;  %v795_v39 = vsel %vm475_vm11, 1.0, %v1407_v55 }
 0x222   :  { %656 = vadd.xlane.f32.xlu0 %v626_v34  ;;  %v1968_v26 = vpop.xlane.xlu0 %516  ;;  %v791_v34 = vsel %vm471_vm9, 1.0, %v1407_v55 }
 0x223   :  { %650 = vadd.xlane.f32.xlu1 %v623_v43 }
 0x226   :  { %658 = vadd.xlane.f32.xlu0 %v627_v7  ;;  %v1992_v43 = vpop.xlane.xlu0 %520  ;;  %v1279_v7 = vpop.eup %1278 }
 0x227   :  { %654 = vadd.xlane.f32.xlu1 %v625_v23  ;;  %v799_v23 = vsel %vm479_vm14, 1.0, %v1407_v55  ;;  %v553_v30 = vmul.f32 0.6931472, %v1279_v7 }
 0x22a   :  { %812 = vadd.xlane.f32.xlu0 %v792_v27 }
 0x22b   :  { %806 = vadd.xlane.f32.xlu1 %v789_v25 }
 0x22c   :  { %v1954_v1 = vpop.xlane.xlu1 %500 }
 0x22d   :  { %v532_v44 = vadd.f32 %v1774_v48, %v1954_v1 }
 0x22e   :  { %816 = vadd.xlane.f32.xlu0 %v794_v22  ;;  %v582_v22 = vsub.f32 %v1662_v20, %v553_v30 }
 0x22f   :  { %1280 = vlog2.f32 %v532_v44  ;;  %808 = vadd.xlane.f32.xlu1 %v790_v49  ;;  %v797_v44 = vsel %vm477_vm13, 1.0, %v1407_v55 }
 0x230   :  { %v1970_v50 = vpop.xlane.xlu1 %506  ;;  %1282 = vlog2.f32 %v533_v18 }
 0x231   :  { %v535_v48 = vadd.f32 %v1782_v54, %v1970_v50  ;;  %v540_v54 = vadd.f32 %v1756_v16, %v1968_v26  ;;  %v542_v16 = vadd.f32 %v1768_v36, %v1992_v43  ;;  %v800_v36 = vsel %vm480_vm10, 1.0, %v1407_v55 }
 0x232   :  { %820 = vadd.xlane.f32.xlu0 %v796_v58 }
 0x233   :  { %1284 = vlog2.f32 %v535_v48  ;;  %810 = vadd.xlane.f32.xlu1 %v791_v34  ;;  %v854_v34 = vsel %vm470_vm2, %v582_v22, 0.0  ;;  %vm1028_vm2 = vcmask 7168  }
 0x234   :  { %1286 = vlog2.f32 %v538_v28 }
 0x235   :  { %1288 = vlog2.f32 %v540_v54 }
 0x236   :  { %824 = vadd.xlane.f32.xlu0 %v798_v8  ;;  %1290 = vlog2.f32 %v536_v62 }
 0x237   :  { %814 = vadd.xlane.f32.xlu1 %v793_v61  ;;  %1292 = vlog2.f32 %v542_v16 }
 0x23a   :  { %826 = vadd.xlane.f32.xlu0 %v799_v23 }
 0x23b   :  { %818 = vadd.xlane.f32.xlu1 %v795_v39 }
 0x23c   :  { %v1281_v27 = vpop.eup %1280 }
 0x23d   :  { %v549_v25 = vmul.f32 0.6931472, %v1281_v27  ;;  %v1283_v18 = vpop.eup %1282 }
 0x23e   :  { %828 = vadd.xlane.f32.xlu0 %v800_v36  ;;  %v551_v54 = vmul.f32 0.6931472, %v1283_v18 }
 0x23f   :  { %822 = vadd.xlane.f32.xlu1 %v797_v44  ;;  %v580_v49 = vsub.f32 %v1719_v56, %v549_v25  ;;  %v801_v56 = vsel %vm481_vm1, 1.0, %v1407_v55 }
 0x240   :  { %v1285_v48 = vpop.eup %1284  ;;  %v581_v61 = vsub.f32 %v1677_v35, %v551_v54  ;;  %v803_v35 = vsel %vm483_vm15, 1.0, %v1407_v55 }
 0x241   :  { %v852_v58 = vsel %vm468_vm8, %v580_v49, 0.0  ;;  %v555_v28 = vmul.f32 0.6931472, %v1285_v48  ;;  %v1287_v8 = vpop.eup %1286  ;;  %v2079_v48 = vld [vmem:[%s2471_s4] sm:$0xff] }
 0x242   :  { %868 = vadd.xlane.f32.xlu0 %v852_v58  ;;  %v1289_v62 = vpop.eup %1288  ;;  %v561_v14 = vmul.f32 0.6931472, %v1287_v8  ;;  %v853_v9 = vsel %vm469_vm3, %v581_v61, 0.0  ;;  %vm964_vm3 = vcmp.gt.f32.partialorder %v2079_v48, 0.0 }
 0x243   :  { %872 = vadd.xlane.f32.xlu1 %v854_v34  ;;  %v583_v20 = vsub.f32 %v1735_v38, %v555_v28  ;;  %v1291_v7 = vpop.eup %1290  ;;  %v802_v38 = vsel %vm482_vm0, 1.0, %v1407_v55  ;;  %v565_v16 = vmul.f32 0.6931472, %v1289_v62  ;;  %v1066_v34 = vsel %vm1028_vm2, %v2079_v48, 0.0 }
 0x244   :  { %v1293_v23 = vpop.eup %1292  ;;  %v586_v39 = vsub.f32 %v1686_v40, %v561_v14  ;;  %v557_v30 = vmul.f32 0.6931472, %v1291_v7  ;;  %v1071_v14 = vsel %vm1028_vm2, %v2108_v63, 0.0  ;;  %v2115_v7 = vld [vmem:[%s2471_s4 + $0x20] sm:$0xff] }
 0x245   :  { %v855_v12 = vsel %vm471_vm9, %v583_v20, 0.0  ;;  %v588_v27 = vsub.f32 %v1697_v47, %v565_v16  ;;  %v569_v36 = vmul.f32 0.6931472, %v1293_v23 }
 0x246   :  { %830 = vadd.xlane.f32.xlu0 %v801_v56  ;;  %v858_v25 = vsel %vm474_vm4, %v586_v39, 0.0  ;;  %v584_v6 = vsub.f32 %v1707_v51, %v557_v30 }
 0x247   :  { %874 = vadd.xlane.f32.xlu1 %v855_v12  ;;  %v860_v40 = vsel %vm476_vm6, %v588_v27, 0.0  ;;  %v590_v44 = vsub.f32 %v1715_v41, %v569_v36  ;;  %v2127_v27 = vld [vmem:[%s2471_s4 + $0x28] sm:$0xff]  ;;  %vm967_vm6 = vcmp.gt.f32.partialorder %v2108_v63, 0.0 }
 0x248   :  { %v856_v47 = vsel %vm472_vm5, %v584_v6, 0.0  ;;  %vm969_vm8 = vcmp.gt.f32.partialorder %v2127_v27, 0.0 }
 0x249   :  { %v862_v51 = vsel %vm478_vm7, %v590_v44, 0.0  ;;  %vm968_vm7 = vcmp.gt.f32.partialorder %v2115_v7, 0.0 }
 0x24a   :  { %832 = vadd.xlane.f32.xlu0 %v802_v38 }
 0x24b   :  { %870 = vadd.xlane.f32.xlu1 %v853_v9 }
 0x24e   :  { %834 = vadd.xlane.f32.xlu0 %v803_v35  ;;  %v1073_v35 = vsel %vm1028_vm2, %v2115_v7, 0.0 }
 0x24f   :  { %880 = vadd.xlane.f32.xlu1 %v858_v25 }
 0x252   :  { %884 = vadd.xlane.f32.xlu0 %v860_v40  ;;  %v2138_v40 = vld [vmem:[%s2471_s4 + $0x30] sm:$0xff] }
 0x253   :  { %v2057_v55 = vpop.xlane.xlu0 %524  ;;  %876 = vadd.xlane.f32.xlu1 %v856_v47  ;;  %vm970_vm9 = vcmp.gt.f32.partialorder %v2138_v40, 0.0 }
 0x254   :  { %v544_v15 = vadd.f32 %v1830_v52, %v2057_v55 }
 0x256   :  { %1294 = vlog2.f32 %v544_v15  ;;  %888 = vadd.xlane.f32.xlu0 %v862_v51  ;;  %v2149_v15 = vld [vmem:[%s2471_s4 + $0x38] sm:$0xff] }
 0x257   :  { %2537 = vst [vmem:[#allocation25_spill] sm:$0xff] %v2149_v15  ;;  %v1079_v0 = vsel %vm1028_vm2, %v2149_v15, 0.0 }
 0x25b   :  { %v2064_v57 = vpop.xlane.xlu1 %514 }
 0x25c   :  { %v539_v41 = vadd.f32 %v1842_v32, %v2064_v57  ;;  %v2084_v32 = vld [vmem:[%s2471_s4 + $0x8] sm:$0xff] }
 0x25d   :  { %v1067_v54 = vsel %vm1028_vm2, %v2084_v32, 0.0  ;;  %vm965_vm4 = vcmp.gt.f32.partialorder %v2084_v32, 0.0 }
 0x25e   :  { %1296 = vlog2.f32 %v539_v41  ;;  %v1068_v8 = vadd.f32 %v1067_v54, %v1066_v34  ;;  %v2177_v34 = vld [vmem:[%s2471_s4 + $0x50] sm:$0xff] }
 0x25f   :  { %v2068_v22 = vpop.xlane.xlu1 %510 }
 0x260   :  { %v537_v10 = vadd.f32 %v1850_v3, %v2068_v22 }
 0x262   :  { %1298 = vlog2.f32 %v537_v10 }
 0x263   :  { %v1295_v18 = vpop.eup %1294  ;;  %v2072_v52 = vpop.xlane.xlu1 %518 }
 0x264   :  { %v541_v21 = vadd.f32 %v1858_v42, %v2072_v52  ;;  %v573_v49 = vmul.f32 0.6931472, %v1295_v18 }
 0x266   :  { %1300 = vlog2.f32 %v541_v21  ;;  %v592_v3 = vsub.f32 %v1796_v2, %v573_v49  ;;  %v2101_v2 = vld [vmem:[%s2471_s4 + $0x10] sm:$0xff]  ;;  %v2166_v21 = vld [vmem:[%s2471_s4 + $0x48] sm:$0xff] }
 0x267   :  { %v2087_v58 = vpop.xlane.xlu1 %522  ;;  %2539 = vst [vmem:[#allocation27_spill] sm:$0xff] %v2166_v21  ;;  %vm966_vm5 = vcmp.gt.f32.partialorder %v2101_v2, 0.0 }
 0x268   :  { %v543_v42 = vadd.f32 %v1870_v17, %v2087_v58  ;;  %v864_v28 = vsel %vm480_vm10, %v592_v3, 0.0  ;;  %v1069_v17 = vsel %vm1028_vm2, %v2101_v2, 0.0  ;;  %v2540_v3 = vld [vmem:[#allocation23_spill] sm:$0xff] }
 0x269   :  { %892 = vadd.xlane.f32.xlu0 %v864_v28  ;;  %v1070_v12 = vadd.f32 %v1069_v17, %v1068_v8  ;;  %v1083_v28 = vsel %vm1028_vm2, %v2166_v21, 0.0  ;;  %2541 = vst [vmem:[#allocation23_spill] sm:$0xff] %v2177_v34  ;;  %v1085_v8 = vsel %vm1028_vm2, %v2177_v34, 0.0  ;;  %v2184_v17 = vld [vmem:[%s2471_s4 + $0x58] sm:$0xff]  ;;  %v2561_v34 = vld [vmem:[#allocation11_spill] sm:$0xff] }
 0x26a   :  { %1302 = vlog2.f32 %v543_v42  ;;  %2542 = vst [vmem:[#allocation28_spill] sm:$0xff] %v2184_v17 }
 0x26b   :  { %v1297_v20 = vpop.eup %1296  ;;  %v1072_v23 = vadd.f32 %v1071_v14, %v1070_v12  ;;  %v1087_v12 = vsel %vm1028_vm2, %v2184_v17, 0.0  ;;  %v2195_v14 = vld [vmem:[%s2471_s4 + $0x60] sm:$0xff] }
 0x26c   :  { %v563_v61 = vmul.f32 0.6931472, %v1297_v20  ;;  %v2186_v20 = vpop.xlane.xlu1 %530 }
 0x26e   :  { %v587_v39 = vsub.f32 %v1805_v45, %v563_v61  ;;  %v1075_v45 = vsel %vm1028_vm2, %v2127_v27, 0.0 }
 0x26f   :  { %v1299_v56 = vpop.eup %1298 }
 0x270   :  { %v559_v62 = vmul.f32 0.6931472, %v1299_v56  ;;  %v859_v25 = vsel %vm475_vm11, %v587_v39, 0.0 }
 0x272   :  { %v585_v38 = vsub.f32 %v1816_v59, %v559_v62  ;;  %v1074_v59 = vadd.f32 %v1073_v35, %v1072_v23  ;;  %v2543_v62 = vld [vmem:[#allocation19_spill] sm:$0xff]  ;;  %v1089_v23 = vsel %vm1028_vm2, %v2195_v14, 0.0 }
 0x273   :  { %v1301_v16 = vpop.eup %1300  ;;  %v547_v61 = vadd.f32 %v2543_v62, %v2186_v20  ;;  %2544 = vst [vmem:[#allocation19_spill] sm:$0xff] %v2195_v14 }
 0x274   :  { %v857_v9 = vsel %vm473_vm12, %v585_v38, 0.0  ;;  %v567_v30 = vmul.f32 0.6931472, %v1301_v16  ;;  %v1076_v44 = vadd.f32 %v1075_v45, %v1074_v59 }
 0x275   :  { %878 = vadd.xlane.f32.xlu1 %v857_v9  ;;  %v2545_v9 = vld [vmem:[#allocation24_spill] sm:$0xff] }
 0x276   :  { %v589_v13 = vsub.f32 %v1809_v53, %v567_v30  ;;  %v1077_v53 = vsel %vm1028_vm2, %v2138_v40, 0.0  ;;  %v2206_v30 = vld [vmem:[%s2471_s4 + $0x68] sm:$0xff] }
 0x277   :  { %v1303_v36 = vpop.eup %1302  ;;  %v1078_v51 = vadd.f32 %v1077_v53, %v1076_v44  ;;  %2546 = vst [vmem:[#allocation24_spill] sm:$0xff] %v2206_v30 }
 0x278   :  { %v571_v6 = vmul.f32 0.6931472, %v1303_v36  ;;  %v861_v47 = vsel %vm477_vm13, %v589_v13, 0.0  ;;  %v2213_v13 = vld [vmem:[%s2471_s4 + $0x70] sm:$0xff] }
 0x279   :  { %882 = vadd.xlane.f32.xlu1 %v859_v25  ;;  %v1080_v10 = vadd.f32 %v1079_v0, %v1078_v51  ;;  %v1091_v25 = vsel %vm1028_vm2, %v2206_v30, 0.0  ;;  %2547 = vst [vmem:[#allocation29_spill] sm:$0xff] %v2213_v13 }
 0x27a   :  { %v591_v33 = vsub.f32 %v1826_v46, %v571_v6  ;;  %v2159_v46 = vld [vmem:[%s2471_s4 + $0x40] sm:$0xff]  ;;  %v2548_v6 = vld [vmem:[#allocation20_spill] sm:$0xff] }
 0x27b   :  { %2538 = vst [vmem:[#allocation26_spill] sm:$0xff] %v2159_v46  ;;  %v1081_v18 = vsel %vm1028_vm2, %v2159_v46, 0.0 }
 0x27c   :  { %v863_v41 = vsel %vm479_vm14, %v591_v33, 0.0  ;;  %v1082_v49 = vadd.f32 %v1081_v18, %v1080_v10  ;;  %v1093_v33 = vsel %vm1028_vm2, %v2213_v13, 0.0 }
 0x27d   :  { %886 = vadd.xlane.f32.xlu1 %v861_v47 }
 0x27e   :  { %v1084_v54 = vadd.f32 %v1083_v28, %v1082_v49 }
 0x280   :  { %v1086_v56 = vadd.f32 %v1085_v8, %v1084_v54  ;;  %v2550_v8 = vld [vmem:[#allocation22_spill] sm:$0xff] }
 0x281   :  { %890 = vadd.xlane.f32.xlu1 %v863_v41  ;;  %v2224_v41 = vld [vmem:[%s2471_s4 + $0x78] sm:$0xff] }
 0x282   :  { %v1088_v38 = vadd.f32 %v1087_v12, %v1086_v56  ;;  %2549 = vst [vmem:[#allocation20_spill] sm:$0xff] %v2224_v41  ;;  %v1095_v10 = vsel %vm1028_vm2, %v2224_v41, 0.0 }
 0x284   :  { %v1090_v36 = vadd.f32 %v1089_v23, %v1088_v38  ;;  %v2551_v23 = vld [vmem:[#allocation18_spill] sm:$0xff] }
 0x286   :  { %v1092_v44 = vadd.f32 %v1091_v25, %v1090_v36 }
 0x287   :  { %v2168_v4 = vpop.xlane.xlu0 %528 }
 0x288   :  { %v546_v42 = vadd.f32 %v2540_v3, %v2168_v4  ;;  %v1094_v0 = vadd.f32 %v1093_v33, %v1092_v44 }
 0x28a   :  { %1304 = vlog2.f32 %v546_v42  ;;  %v1096_v24 = vadd.f32 %v1095_v10, %v1094_v0 }
 0x28b   :  { %1306 = vlog2.f32 %v547_v61  ;;  %v629_v53 = vpop.xlane.xlu0 %628 }
 0x28c   :  { %v1097_v12 = vrot.slane %v1096_v24, 4 }
 0x28f   :  { %v633_v49 = vpop.xlane.xlu0 %632 }
 0x293   :  { %v637_v62 = vpop.xlane.xlu0 %636 }
 0x294   :  { %v2197_v16 = vpop.xlane.xlu1 %526 }
 0x295   :  { %v545_v39 = vadd.f32 %v2545_v9, %v2197_v16 }
 0x297   :  { %v1305_v35 = vpop.eup %1304  ;;  %1308 = vlog2.f32 %v545_v39  ;;  %v1098_v39 = vadd.f32 %v1097_v12, %v1096_v24  ;;  %v641_v36 = vpop.xlane.xlu0 %640 }
 0x298   :  { %v577_v59 = vmul.f32 0.6931472, %v1305_v35  ;;  %v631_v51 = vpop.xlane.xlu1 %630  ;;  %v1307_v18 = vpop.eup %1306 }
 0x299   :  { %v579_v54 = vmul.f32 0.6931472, %v1307_v18  ;;  %v1099_v25 = vrot.slane %v1098_v39, 2  ;;  %v661_v31 = vmul.f32 0.1, %v631_v51 }
 0x29a   :  { %v594_v45 = vsub.f32 %v2548_v6, %v577_v59 }
 0x29b   :  { %v595_v9 = vsub.f32 %v2551_v23, %v579_v54  ;;  %v1100_v6 = vadd.f32 %v1099_v25, %v1098_v39  ;;  %v662_v23 = vmul.f32 0.1, %v633_v49  ;;  %v2554_v25 = vld [vmem:[#allocation4_spill] sm:$0xff] }
 0x29c   :  { %v866_v47 = vsel %vm482_vm0, %v594_v45, 0.0  ;;  %v635_v3 = vpop.xlane.xlu1 %634  ;;  %v645_v45 = vpop.xlane.xlu0 %644 }
 0x29d   :  { %896 = vadd.xlane.f32.xlu0 %v866_v47  ;;  %v867_v35 = vsel %vm483_vm15, %v595_v9, 0.0  ;;  %v1101_v47 = vrot.slane %v1100_v6, 1  ;;  %v668_v13 = vmul.f32 0.1, %v645_v45 }
 0x29f   :  { %v1102_v60 = vadd.f32 %v1101_v47, %v1100_v6  ;;  %v2257_v6 = vsub.f32 %v662_v23, %v2554_v25  ;;  %v666_v23 = vmul.f32 0.1, %v641_v36 }
 0x2a0   :  { %v639_v61 = vpop.xlane.xlu1 %638  ;;  %v649_v33 = vpop.xlane.xlu0 %648 }
 0x2a1   :  { %v696_v49 = vmul.f32 1.442695, %v2257_v6  ;;  %v670_v21 = vmul.f32 0.1, %v649_v33 }
 0x2a4   :  { %v1309_v42 = vpop.eup %1308  ;;  %v643_v59 = vpop.xlane.xlu1 %642 }
 0x2a5   :  { %v575_v28 = vmul.f32 0.6931472, %v1309_v42  ;;  %v2238_v10 = vpop.xlane.xlu0 %652  ;;  %v660_v42 = vmul.f32 0.1, %v629_v53  ;;  %v664_v53 = vmul.f32 0.1, %v637_v62 }
 0x2a7   :  { %v593_v56 = vsub.f32 %v2550_v8, %v575_v28  ;;  %v2552_v28 = vld [vmem:[#allocation9_spill] sm:$0xff] }
 0x2a8   :  { %v647_v44 = vpop.xlane.xlu1 %646  ;;  %v2245_v54 = vsub.f32 %v661_v31, %v2552_v28  ;;  %v2553_v8 = vld [vmem:[#allocation5_spill] sm:$0xff]  ;;  %v2555_v31 = vld [vmem:[#allocation6_spill] sm:$0xff]  ;;  %v2556_v28 = vld [vmem:[#allocation12_spill] sm:$0xff] }
 0x2a9   :  { %v865_v38 = vsel %vm481_vm1, %v593_v56, 0.0  ;;  %v2242_v24 = vpop.xlane.xlu0 %804  ;;  %v2248_v56 = vsub.f32 %v660_v42, %v2553_v8  ;;  %v2268_v8 = vsub.f32 %v664_v53, %v2556_v28  ;;  %v2559_v53 = vld [vmem:[#allocation15_spill] sm:$0xff]  ;;  %v669_v17 = vmul.f32 0.1, %v647_v44 }
 0x2aa   :  { %894 = vadd.xlane.f32.xlu1 %v865_v38  ;;  %v694_v9 = vmul.f32 1.442695, %v2245_v54 }
 0x2ab   :  { %v692_v39 = vmul.f32 1.442695, %v2248_v56  ;;  %v2302_v45 = vsub.f32 %v669_v17, %v2561_v34  ;;  %v2562_v17 = vld [vmem:[#allocation3_spill] sm:$0xff] }
 0x2ac   :  { %v2236_v0 = vpop.xlane.xlu1 %650  ;;  %1310 = vpow2.f32 %v694_v9  ;;  %v667_v9 = vmul.f32 0.1, %v643_v59 }
 0x2ad   :  { %v2250_v12 = vpop.xlane.xlu0 %656  ;;  %1312 = vpow2.f32 %v692_v39 }
 0x2ae   :  { %898 = vadd.xlane.f32.xlu1 %v867_v35  ;;  %v663_v35 = vmul.f32 0.1, %v635_v3  ;;  %v2557_v3 = vld [vmem:[#allocation16_spill] sm:$0xff]  ;;  %1314 = vpow2.f32 %v696_v49 }
 0x2b0   :  { %v2240_v18 = vpop.xlane.xlu1 %654  ;;  %v2264_v42 = vsub.f32 %v663_v35, %v2555_v31  ;;  %v2558_v35 = vld [vmem:[#allocation10_spill] sm:$0xff] }
 0x2b1   :  { %v2259_v51 = vpop.xlane.xlu0 %658  ;;  %v2281_v31 = vsub.f32 %v666_v23, %v2558_v35 }
 0x2b2   :  { %v698_v62 = vmul.f32 1.442695, %v2264_v42 }
 0x2b3   :  { %v704_v49 = vmul.f32 1.442695, %v2281_v31 }
 0x2b4   :  { %v807_v11 = vpop.xlane.xlu1 %806  ;;  %1316 = vpow2.f32 %v698_v62  ;;  %v2560_v62 = vld [vmem:[#allocation7_spill] sm:$0xff] }
 0x2b5   :  { %v2274_v25 = vpop.xlane.xlu0 %812  ;;  %v1139_v46 = vadd.f32 -1.0, %v807_v11 }
 0x2b7   :  { %v917_v11 = vmax.f32 %v1139_v46, 1.0 }
 0x2b8   :  { %v2252_v38 = vpop.xlane.xlu1 %808 }
 0x2b9   :  { %v2286_v36 = vpop.xlane.xlu0 %816 }
 0x2bc   :  { %v2261_v47 = vpop.xlane.xlu1 %810 }
 0x2bf   :  { %1113 = vperm.xlu1 %1221, %v1102_v60   ;;  %v665_v60 = vmul.f32 0.1, %v639_v61  ;;  %v700_v61 = vmul.f32 1.442695, %v2268_v8 }
 0x2c0   :  { %v2276_v30 = vpop.xlane.xlu1 %814 }
 0x2c1   :  { %v2271_v41 = vsub.f32 %v665_v60, %v2557_v3  ;;  %1318 = vpow2.f32 %v700_v61  ;;  %v2284_v60 = vsub.f32 %v667_v9, %v2559_v53  ;;  %v1311_v3 = vpop.eup %1310  ;;  %v2294_v61 = vsub.f32 %v668_v13, %v2560_v62  ;;  %v2296_v9 = vpop.xlane.xlu0 %820 }
 0x2c2   :  { %v1313_v59 = vpop.eup %1312  ;;  %v725_v23 = vadd.f32 %v1311_v3, %v1936_v37  ;;  %v671_v62 = vmul.f32 0.1, %v2236_v0 }
 0x2c3   :  { %v702_v39 = vmul.f32 1.442695, %v2271_v41  ;;  %v706_v14 = vmul.f32 1.442695, %v2284_v60  ;;  %v1315_v53 = vpop.eup %1314  ;;  %v708_v44 = vmul.f32 1.442695, %v2294_v61 }
 0x2c4   :  { %v2288_v28 = vpop.xlane.xlu1 %818  ;;  %v1317_v37 = vpop.eup %1316  ;;  %v726_v13 = vadd.f32 %v1315_v53, %v1928_v5  ;;  %v672_v53 = vmul.f32 0.1, %v2238_v10 }
 0x2c5   :  { %1320 = vpow2.f32 %v702_v39  ;;  %v724_v39 = vadd.f32 %v1313_v59, %v1954_v1  ;;  %v2308_v1 = vpop.xlane.xlu0 %824  ;;  %v2313_v59 = vsub.f32 %v670_v21, %v2562_v17  ;;  %v727_v33 = vadd.f32 %v1317_v37, %v1970_v50 }
 0x2c6   :  { %1322 = vpow2.f32 %v704_v49  ;;  %v710_v49 = vmul.f32 1.442695, %v2302_v45 }
 0x2c7   :  { %1324 = vpow2.f32 %v706_v14 }
 0x2c8   :  { %v2298_v35 = vpop.xlane.xlu1 %822  ;;  %1326 = vlog2.f32 %v725_v23  ;;  %v1138_v23 = vadd.f32 -1.0, %v2242_v24 }
 0x2c9   :  { %1328 = vlog2.f32 %v724_v39  ;;  %v2563_v39 = vld [vmem:[#allocation8_spill] sm:$0xff]  ;;  %v2324_v21 = vpop.xlane.xlu0 %826 }
 0x2ca   :  { %1330 = vpow2.f32 %v708_v44  ;;  %v2319_v0 = vsub.f32 %v671_v62, %v2563_v39  ;;  %v712_v44 = vmul.f32 1.442695, %v2313_v59  ;;  %v916_v37 = vmax.f32 %v1138_v23, 1.0 }
 0x2cb   :  { %1332 = vlog2.f32 %v726_v13  ;;  %v674_v13 = vmul.f32 0.1, %v2250_v12  ;;  %v1141_v62 = vadd.f32 -1.0, %v2261_v47  ;;  %v2565_v12 = vld [vmem:[#allocation13_spill] sm:$0xff]  ;;  %v1143_v47 = vadd.f32 -1.0, %v2276_v30 }
 0x2cc   :  { %v2310_v14 = vpop.xlane.xlu1 %872  ;;  %1334 = vpow2.f32 %v710_v49  ;;  %v714_v46 = vmul.f32 1.442695, %v2319_v0 }
 0x2cd   :  { %1336 = vlog2.f32 %v727_v33  ;;  %v2338_v23 = vsub.f32 %v674_v13, %v2565_v12 }
 0x2ce   :  { %v1319_v3 = vpop.eup %1318 }
 0x2cf   :  { %v728_v5 = vadd.f32 %v1319_v3, %v1948_v29  ;;  %v1140_v29 = vadd.f32 -1.0, %v2252_v38  ;;  %v2564_v3 = vld [vmem:[#allocation14_spill] sm:$0xff]  ;;  %v1142_v38 = vadd.f32 -1.0, %v2274_v25  ;;  %v720_v13 = vmul.f32 1.442695, %v2338_v23 }
 0x2d0   :  { %v2326_v50 = vpop.xlane.xlu1 %874 }
 0x2d1   :  { %1338 = vlog2.f32 %v728_v5  ;;  %v918_v33 = vmax.f32 %v1140_v29, 1.0  ;;  %v2340_v5 = vpop.xlane.xlu0 %828 }
 0x2d2   :  { %v1321_v34 = vpop.eup %1320  ;;  %1340 = vrcp.f32 %v917_v11 }
 0x2d3   :  { %v729_v15 = vadd.f32 %v1321_v34, %v2068_v22  ;;  %v1323_v24 = vpop.eup %1322  ;;  %v2332_v22 = vsub.f32 %v672_v53, %v2564_v3  ;;  %v2566_v3 = vld [vmem:[#allocation21_spill] sm:$0xff] }
 0x2d4   :  { %v1325_v10 = vpop.eup %1324  ;;  %v730_v34 = vadd.f32 %v1323_v24, %v1940_v19  ;;  %v871_v39 = vpop.xlane.xlu1 %870  ;;  %v673_v19 = vmul.f32 0.1, %v2240_v18 }
 0x2d5   :  { %1342 = vlog2.f32 %v729_v15  ;;  %v1327_v49 = vpop.eup %1326  ;;  %v731_v15 = vadd.f32 %v1325_v10, %v2064_v57  ;;  %v716_v11 = vmul.f32 1.442695, %v2332_v22  ;;  %v921_v57 = vmax.f32 %v1143_v47, 1.0  ;;  %v869_v18 = vpop.xlane.xlu0 %868 }
 0x2d6   :  { %1344 = vpow2.f32 %v712_v44  ;;  %v1329_v17 = vpop.eup %1328  ;;  %v743_v53 = vmul.f32 0.6931472, %v1327_v49  ;;  %v919_v44 = vmax.f32 %v1141_v62, 1.0  ;;  %v2349_v30 = vsub.f32 %v673_v19, %v2566_v3  ;;  %v2567_v3 = vld [vmem:[#allocation17_spill] sm:$0xff] }
 0x2d7   :  { %1346 = vrcp.f32 %v916_v37  ;;  %v741_v24 = vmul.f32 0.6931472, %v1329_v17  ;;  %v1331_v25 = vpop.eup %1330  ;;  %v920_v37 = vmax.f32 %v1142_v38, 1.0  ;;  %v1144_v38 = vadd.f32 -1.0, %v2286_v36 }
 0x2d8   :  { %1348 = vpow2.f32 %v714_v46  ;;  %v1333_v29 = vpop.eup %1332  ;;  %v773_v10 = vsub.f32 %v2245_v54, %v743_v53  ;;  %v2352_v62 = vpop.xlane.xlu1 %880  ;;  %v1145_v54 = vadd.f32 -1.0, %v2288_v28  ;;  %v675_v19 = vmul.f32 0.1, %v2259_v51 }
 0x2d9   :  { %1350 = vlog2.f32 %v730_v34  ;;  %v1335_v46 = vpop.eup %1334  ;;  %v772_v49 = vsub.f32 %v2248_v56, %v741_v24  ;;  %v732_v34 = vadd.f32 %v1331_v25, %v1968_v26  ;;  %v718_v26 = vmul.f32 1.442695, %v2349_v30 }
 0x2da   :  { %1352 = vrcp.f32 %v918_v33  ;;  %v1337_v17 = vpop.eup %1336  ;;  %v745_v33 = vmul.f32 0.6931472, %v1333_v29  ;;  %v901_v12 = vsub.f32 %v871_v39, %v773_v10  ;;  %v922_v36 = vmax.f32 %v1144_v38, 1.0 }
 0x2db   :  { %1354 = vlog2.f32 %v731_v15  ;;  %v900_v53 = vsub.f32 %v869_v18, %v772_v49  ;;  %v923_v28 = vmax.f32 %v1145_v54, 1.0  ;;  %v2365_v18 = vsub.f32 %v675_v19, %v2567_v3 }
 0x2dc   :  { %1356 = vpow2.f32 %v716_v11  ;;  %v733_v11 = vadd.f32 %v1335_v46, %v2072_v52  ;;  %v774_v39 = vsub.f32 %v2257_v6, %v745_v33  ;;  %v877_v52 = vpop.xlane.xlu1 %876 }
 0x2dd   :  { %1358 = vrcp.f32 %v919_v44  ;;  %v747_v44 = vmul.f32 0.6931472, %v1337_v17  ;;  %v1146_v17 = vadd.f32 -1.0, %v2296_v9  ;;  %v722_v9 = vmul.f32 1.442695, %v2365_v18 }
 0x2de   :  { %1360 = vrcp.f32 %v920_v37  ;;  %v1339_v15 = vpop.eup %1338  ;;  %v902_v51 = vsub.f32 %v2310_v14, %v774_v39  ;;  %v1147_v14 = vadd.f32 -1.0, %v2298_v35 }
 0x2df   :  { %1362 = vpow2.f32 %v720_v13  ;;  %v1341_v47 = vpop.eup %1340  ;;  %v749_v37 = vmul.f32 0.6931472, %v1339_v15  ;;  %v2361_v13 = vpop.xlane.xlu0 %830  ;;  %v775_v49 = vsub.f32 %v2264_v42, %v747_v44 }
 0x2e0   :  { %1364 = vrcp.f32 %v921_v57  ;;  %v935_v25 = vmul.f32 %v1341_v47, %v901_v12 }
 0x2e1   :  { %1366 = vlog2.f32 %v732_v34  ;;  %v776_v33 = vsub.f32 %v2268_v8, %v749_v37  ;;  %v903_v15 = vsub.f32 %v2326_v50, %v775_v49  ;;  %v924_v50 = vmax.f32 %v1146_v17, 1.0 }
 0x2e2   :  { %v1343_v56 = vpop.eup %1342  ;;  %1368 = vlog2.f32 %v733_v11  ;;  %v981_v38 = vmul.f32 -1.4285715, %v935_v25 }
 0x2e3   :  { %v1345_v24 = vpop.eup %1344  ;;  %v751_v10 = vmul.f32 0.6931472, %v1343_v56  ;;  %1370 = vpow2.f32 %v718_v26  ;;  %v2377_v8 = vpop.xlane.xlu0 %832 }
 0x2e4   :  { %v1347_v29 = vpop.eup %1346  ;;  %v734_v6 = vadd.f32 %v1345_v24, %v1992_v43  ;;  %1372 = vrcp.f32 %v922_v36  ;;  %v904_v43 = vsub.f32 %v877_v52, %v776_v33  ;;  %v925_v36 = vmax.f32 %v1147_v14, 1.0 }
 0x2e5   :  { %v1349_v46 = vpop.eup %1348  ;;  %v933_v57 = vmul.f32 %v1347_v29, %v900_v53  ;;  %1374 = vrcp.f32 %v923_v28  ;;  %v777_v56 = vsub.f32 %v2271_v41, %v751_v10 }
 0x2e6   :  { %v1351_v34 = vpop.eup %1350  ;;  %v735_v11 = vadd.f32 %v1349_v46, %v2087_v58  ;;  %1376 = vlog2.f32 %v734_v6  ;;  %v997_v58 = vmul.f32 %v981_v38, %v2084_v32  ;;  %v1148_v46 = vadd.f32 -1.0, %v2308_v1 }
 0x2e7   :  { %v1353_v12 = vpop.eup %1352  ;;  %v980_v42 = vmul.f32 -1.4285715, %v933_v57  ;;  %v753_v26 = vmul.f32 0.6931472, %v1351_v34  ;;  %v1149_v6 = vadd.f32 -1.0, %v2324_v21  ;;  %v2390_v17 = vpop.xlane.xlu0 %834 }
 0x2e8   :  { %v1355_v47 = vpop.eup %1354  ;;  %v937_v53 = vmul.f32 %v1353_v12, %v902_v51  ;;  %1378 = vlog2.f32 %v735_v11  ;;  %v1013_v10 = vsel %vm965_vm4, %v997_v58, 0.0  ;;  %v1150_v58 = vadd.f32 -1.0, %v2340_v5 }
 0x2e9   :  { %v1357_v19 = vpop.eup %1356  ;;  %v755_v41 = vmul.f32 0.6931472, %v1355_v47  ;;  %v996_v37 = vmul.f32 %v980_v42, %v2079_v48  ;;  %1380 = vpow2.f32 %v722_v9  ;;  %v778_v3 = vsub.f32 %v2281_v31, %v753_v26 }
 0x2ea   :  { %v1359_v35 = vpop.eup %1358  ;;  %v982_v29 = vmul.f32 -1.4285715, %v937_v53  ;;  %v736_v57 = vadd.f32 %v1357_v19, %v2057_v55  ;;  %1382 = vrcp.f32 %v924_v50  ;;  %v926_v31 = vmax.f32 %v1148_v46, 1.0 }
 0x2eb   :  { %v1361_v24 = vpop.eup %1360  ;;  %v939_v39 = vmul.f32 %v1359_v35, %v903_v15  ;;  %1384 = vrcp.f32 %v925_v36  ;;  %v779_v1 = vsub.f32 %v2284_v60, %v755_v41  ;;  %v1012_v55 = vsel %vm964_vm3, %v996_v37, 0.0  ;;  %v885_v26 = vpop.xlane.xlu0 %884 }
 0x2ec   :  { %v1363_v25 = vpop.eup %1362  ;;  %v941_v28 = vmul.f32 %v1361_v24, %v904_v43  ;;  %v998_v12 = vmul.f32 %v982_v29, %v2101_v2  ;;  %v906_v32 = vsub.f32 %v2352_v62, %v778_v3  ;;  %v1030_v15 = vsel %vm1028_vm2, %v1013_v10, 0.0 }
 0x2ed   :  { %v1365_v52 = vpop.eup %1364  ;;  %v983_v34 = vmul.f32 -1.4285715, %v939_v39  ;;  %1386 = vlog2.f32 %v736_v57  ;;  %v738_v47 = vadd.f32 %v1363_v25, %v2168_v4  ;;  %v927_v48 = vmax.f32 %v1149_v6, 1.0 }
 0x2ee   :  { %v1367_v51 = vpop.eup %1366  ;;  %v984_v14 = vmul.f32 -1.4285715, %v941_v28  ;;  %v1029_v53 = vsel %vm1028_vm2, %v1012_v55, 0.0  ;;  %v1014_v19 = vsel %vm966_vm5, %v998_v12, 0.0  ;;  %1388 = vrcp.f32 %v926_v31 }
 0x2ef   :  { %v1369_v33 = vpop.eup %1368  ;;  %v757_v21 = vmul.f32 0.6931472, %v1367_v51  ;;  %v999_v43 = vmul.f32 %v983_v34, %v2108_v63  ;;  %v1031_v9 = vadd.f32 %v1030_v15, %v1029_v53  ;;  %1390 = vlog2.f32 %v738_v47  ;;  %v2568_v15 = vld [vmem:[#allocation25_spill] sm:$0xff] }
 0x2f0   :  { %v759_v62 = vmul.f32 0.6931472, %v1369_v33  ;;  %v1000_v50 = vmul.f32 %v984_v14, %v2115_v7  ;;  %1392 = vrcp.f32 %v927_v48  ;;  %v1032_v39 = vsel %vm1028_vm2, %v1014_v19, 0.0 }
 0x2f1   :  { %v780_v4 = vsub.f32 %v2294_v61, %v757_v21  ;;  %v1015_v41 = vsel %vm967_vm6, %v999_v43, 0.0  ;;  %v1033_v37 = vadd.f32 %v1032_v39, %v1031_v9  ;;  %v928_v46 = vmax.f32 %v1150_v58, 1.0  ;;  %v2569_v58 = vld [vmem:[#allocation26_spill] sm:$0xff] }
 0x2f2   :  { %v781_v5 = vsub.f32 %v2302_v45, %v759_v62  ;;  %v1034_v45 = vsel %vm1028_vm2, %v1015_v41, 0.0  ;;  %vm971_vm10 = vcmp.gt.f32.partialorder %v2568_v15, 0.0  ;;  %vm972_vm11 = vcmp.gt.f32.partialorder %v2569_v58, 0.0 }
 0x2f3   :  { %v908_v28 = vsub.f32 %v885_v26, %v780_v4  ;;  %v1035_v33 = vadd.f32 %v1034_v45, %v1033_v37 }
 0x2fe   :  { %v879_v54 = vpop.xlane.xlu1 %878 }
 0x2ff   :  { %v905_v44 = vsub.f32 %v879_v54, %v777_v56  ;;  %v1371_v54 = vpop.eup %1370 }
 0x300   :  { %v1373_v42 = vpop.eup %1372  ;;  %v737_v2 = vadd.f32 %v1371_v54, %v2197_v16  ;;  %v1152_v16 = vadd.f32 -1.0, %v2377_v8  ;;  %v889_v8 = vpop.xlane.xlu0 %888 }
 0x301   :  { %v943_v49 = vmul.f32 %v1365_v52, %v905_v44  ;;  %v1375_v56 = vpop.eup %1374  ;;  %v945_v35 = vmul.f32 %v1373_v42, %v906_v32  ;;  %v1016_v52 = vsel %vm968_vm7, %v1000_v50, 0.0 }
 0x302   :  { %v883_v38 = vpop.xlane.xlu1 %882  ;;  %v1377_v44 = vpop.eup %1376  ;;  %v1036_v6 = vsel %vm1028_vm2, %v1016_v52, 0.0  ;;  %1394 = vlog2.f32 %v737_v2  ;;  %v930_v14 = vmax.f32 %v1152_v16, 1.0  ;;  %v2570_v2 = vld [vmem:[#allocation27_spill] sm:$0xff] }
 0x303   :  { %v985_v11 = vmul.f32 -1.4285715, %v943_v49  ;;  %v907_v60 = vsub.f32 %v883_v38, %v779_v1  ;;  %v1379_v61 = vpop.eup %1378  ;;  %v986_v29 = vmul.f32 -1.4285715, %v945_v35  ;;  %v761_v57 = vmul.f32 0.6931472, %v1377_v44 }
 0x304   :  { %v1381_v51 = vpop.eup %1380  ;;  %v763_v34 = vmul.f32 0.6931472, %v1379_v61  ;;  %1396 = vrcp.f32 %v928_v46  ;;  %v1037_v31 = vadd.f32 %v1036_v6, %v1035_v33  ;;  %v893_v26 = vpop.xlane.xlu0 %892  ;;  %vm973_vm12 = vcmp.gt.f32.partialorder %v2570_v2, 0.0 }
 0x305   :  { %v1001_v24 = vmul.f32 %v985_v11, %v2127_v27  ;;  %v947_v36 = vmul.f32 %v1375_v56, %v907_v60  ;;  %v1383_v49 = vpop.eup %1382  ;;  %v1002_v1 = vmul.f32 %v986_v29, %v2138_v40  ;;  %v782_v27 = vsub.f32 %v2313_v59, %v761_v57 }
 0x306   :  { %v887_v25 = vpop.xlane.xlu1 %886  ;;  %v1385_v7 = vpop.eup %1384  ;;  %v949_v38 = vmul.f32 %v1383_v49, %v908_v28  ;;  %v739_v12 = vadd.f32 %v1381_v51, %v2186_v20  ;;  %v1151_v11 = vadd.f32 -1.0, %v2361_v13  ;;  %v783_v60 = vsub.f32 %v2319_v0, %v763_v34 }
 0x307   :  { %v1017_v10 = vsel %vm969_vm8, %v1001_v24, 0.0  ;;  %v987_v63 = vmul.f32 -1.4285715, %v947_v36  ;;  %v909_v3 = vsub.f32 %v887_v25, %v781_v5  ;;  %v1387_v32 = vpop.eup %1386  ;;  %v1018_v59 = vsel %vm970_vm9, %v1002_v1, 0.0 }
 0x308   :  { %v1038_v55 = vsel %vm1028_vm2, %v1017_v10, 0.0  ;;  %v988_v42 = vmul.f32 -1.4285715, %v949_v38  ;;  %v910_v48 = vsub.f32 %v889_v8, %v782_v27  ;;  %v765_v20 = vmul.f32 0.6931472, %v1387_v32  ;;  %v1389_v43 = vpop.eup %1388 }
 0x309   :  { %v1003_v21 = vmul.f32 %v987_v63, %v2568_v15  ;;  %v951_v54 = vmul.f32 %v1385_v7, %v909_v3  ;;  %v1039_v53 = vadd.f32 %v1038_v55, %v1037_v31  ;;  %1398 = vlog2.f32 %v739_v12  ;;  %v1391_v9 = vpop.eup %1390  ;;  %v2571_v63 = vld [vmem:[#allocation23_spill] sm:$0xff]  ;;  %v2572_v7 = vld [vmem:[#allocation28_spill] sm:$0xff] }
 0x30a   :  { %v891_v47 = vpop.xlane.xlu1 %890  ;;  %1400 = vrcp.f32 %v930_v14  ;;  %v929_v13 = vmax.f32 %v1151_v11, 1.0  ;;  %v1040_v35 = vsel %vm1028_vm2, %v1018_v59, 0.0  ;;  %v1393_v50 = vpop.eup %1392  ;;  %v1153_v0 = vadd.f32 -1.0, %v2390_v17  ;;  %v2573_v15 = vld [vmem:[#allocation19_spill] sm:$0xff] }
 0x30b   :  { %v1019_v62 = vsel %vm971_vm10, %v1003_v21, 0.0  ;;  %v989_v56 = vmul.f32 -1.4285715, %v951_v54  ;;  %v911_v19 = vsub.f32 %v891_v47, %v783_v60  ;;  %v1004_v40 = vmul.f32 %v988_v42, %v2569_v58 }
 0x30c   :  { %v953_v4 = vmul.f32 %v1389_v43, %v910_v48  ;;  %v1041_v44 = vadd.f32 %v1040_v35, %v1039_v53  ;;  %v784_v24 = vsub.f32 %v2332_v22, %v765_v20  ;;  %v1042_v36 = vsel %vm1028_vm2, %v1019_v62, 0.0  ;;  %v2574_v62 = vld [vmem:[#allocation29_spill] sm:$0xff]  ;;  %v2575_v35 = vld [vmem:[#allocation24_spill] sm:$0xff] }
 0x30d   :  { %v1005_v39 = vmul.f32 %v989_v56, %v2570_v2  ;;  %v955_v41 = vmul.f32 %v1393_v50, %v911_v19  ;;  %v769_v5 = vmul.f32 0.6931472, %v1391_v9  ;;  %1402 = vrcp.f32 %v929_v13 }
 0x30e   :  { %v912_v25 = vsub.f32 %v893_v26, %v784_v24  ;;  %v931_v17 = vmax.f32 %v1153_v0, 1.0  ;;  %v1020_v61 = vsel %vm972_vm11, %v1004_v40, 0.0  ;;  %v990_v37 = vmul.f32 -1.4285715, %v953_v4  ;;  %v2576_v24 = vld [vmem:[#allocation20_spill] sm:$0xff] }
 0x30f   :  { %v1043_v29 = vadd.f32 %v1042_v36, %v1041_v44  ;;  %v1395_v28 = vpop.eup %1394  ;;  %v1021_v57 = vsel %vm973_vm12, %v1005_v39, 0.0  ;;  %v991_v51 = vmul.f32 -1.4285715, %v955_v41  ;;  %v786_v22 = vsub.f32 %v2338_v23, %v769_v5 }
 0x310   :  { %v1044_v16 = vsel %vm1028_vm2, %v1020_v61, 0.0  ;;  %1404 = vrcp.f32 %v931_v17  ;;  %v1006_v3 = vmul.f32 %v990_v37, %v2571_v63  ;;  %vm974_vm13 = vcmp.gt.f32.partialorder %v2571_v63, 0.0 }
 0x311   :  { %v1397_v46 = vpop.eup %1396  ;;  %v1045_v49 = vadd.f32 %v1044_v16, %v1043_v29  ;;  %v1046_v6 = vsel %vm1028_vm2, %v1021_v57, 0.0  ;;  %v1007_v1 = vmul.f32 %v991_v51, %v2572_v7  ;;  %v767_v38 = vmul.f32 0.6931472, %v1395_v28  ;;  %v2577_v57 = vld [vmem:[#allocation2_spill] sm:$0xff] }
 0x312   :  { %v957_v10 = vmul.f32 %v1397_v46, %v912_v25  ;;  %vm975_vm14 = vcmp.gt.f32.partialorder %v2572_v7, 0.0  ;;  %v1022_v23 = vsel %vm974_vm13, %v1006_v3, 0.0  ;;  %vm976_vm15 = vcmp.gt.f32.partialorder %v2573_v15, 0.0 }
 0x313   :  { %v1047_v8 = vadd.f32 %v1046_v6, %v1045_v49  ;;  %v1023_v12 = vsel %vm975_vm14, %v1007_v1, 0.0  ;;  %v785_v32 = vsub.f32 %v2349_v30, %v767_v38  ;;  %v1048_v31 = vsel %vm1028_vm2, %v1022_v23, 0.0 }
 0x314   :  { %v992_v27 = vmul.f32 -1.4285715, %v957_v10  ;;  %v1050_v42 = vsel %vm1028_vm2, %v1023_v12, 0.0  ;;  %vm978_vm0 = vcmp.gt.f32.partialorder %v2574_v62, 0.0  ;;  %vm977_vm1 = vcmp.gt.f32.partialorder %v2575_v35, 0.0 }
 0x315   :  { %v1049_v60 = vadd.f32 %v1048_v31, %v1047_v8  ;;  %vm979_vm3 = vcmp.gt.f32.partialorder %v2576_v24, 0.0  ;;  %vm1105_vm4 = vcmp.eq.s32.totalorder %v2577_v57, 0 }
 0x316   :  { %v1399_v34 = vpop.eup %1398  ;;  %v1008_v21 = vmul.f32 %v992_v27, %v2573_v15 }
 0x317   :  { %v1401_v33 = vpop.eup %1400  ;;  %v771_v14 = vmul.f32 0.6931472, %v1399_v34  ;;  %v1051_v30 = vadd.f32 %v1050_v42, %v1049_v60 }
 0x318   :  { %v1024_v20 = vsel %vm976_vm15, %v1008_v21, 0.0 }
 0x319   :  { %v787_v53 = vsub.f32 %v2365_v18, %v771_v14  ;;  %v1052_v58 = vsel %vm1028_vm2, %v1024_v20, 0.0 }
 0x31a   :  { %v1403_v11 = vpop.eup %1402  ;;  %v1053_v4 = vadd.f32 %v1052_v58, %v1051_v30 }
 0x31d   :  { %v1405_v13 = vpop.eup %1404 }
 0x326   :  { %v897_v52 = vpop.xlane.xlu0 %896 }
 0x327   :  { %v914_v45 = vsub.f32 %v897_v52, %v786_v22 }
 0x329   :  { %v961_v55 = vmul.f32 %v1401_v33, %v914_v45 }
 0x32b   :  { %v994_v47 = vmul.f32 -1.4285715, %v961_v55 }
 0x32d   :  { %v1010_v56 = vmul.f32 %v994_v47, %v2574_v62 }
 0x32f   :  { %v1026_v40 = vsel %vm978_vm0, %v1010_v56, 0.0 }
 0x330   :  { %v1056_v39 = vsel %vm1028_vm2, %v1026_v40, 0.0 }
 0x333   :  { %v895_v54 = vpop.xlane.xlu1 %894 }
 0x334   :  { %v913_v59 = vsub.f32 %v895_v54, %v785_v32 }
 0x336   :  { %v959_v48 = vmul.f32 %v1403_v11, %v913_v59 }
 0x337   :  { %v899_v43 = vpop.xlane.xlu1 %898 }
 0x338   :  { %v993_v19 = vmul.f32 -1.4285715, %v959_v48  ;;  %v915_v9 = vsub.f32 %v899_v43, %v787_v53 }
 0x33a   :  { %v1009_v50 = vmul.f32 %v993_v19, %v2575_v35  ;;  %v963_v0 = vmul.f32 %v1405_v13, %v915_v9 }
 0x33b   :  { %v1114_v51 = vpop.permute.xlu1 %1113 }
 0x33c   :  { %v1025_v18 = vsel %vm977_vm1, %v1009_v50, 0.0  ;;  %v995_v26 = vmul.f32 -1.4285715, %v963_v0 }
 0x33d   :  { %v1054_v44 = vsel %vm1028_vm2, %v1025_v18, 0.0 }
 0x33e   :  { %v1055_v36 = vadd.f32 %v1054_v44, %v1053_v4  ;;  %v1011_v2 = vmul.f32 %v995_v26, %v2576_v24 }
 0x340   :  { %v1057_v41 = vadd.f32 %v1056_v39, %v1055_v36  ;;  %v1027_v5 = vsel %vm979_vm3, %v1011_v2, 0.0 }
 0x341   :  { %v1058_v25 = vsel %vm1028_vm2, %v1027_v5, 0.0 }
 0x342   :  { %v1059_v17 = vadd.f32 %v1058_v25, %v1057_v41 }
 0x344   :  { %v1060_v61 = vrot.slane %v1059_v17, 4 }
 0x346   :  { %v1061_v37 = vadd.f32 %v1060_v61, %v1059_v17 }
 0x348   :  { %v1062_v29 = vrot.slane %v1061_v37, 2 }
 0x34a   :  { %v1063_v28 = vadd.f32 %v1062_v29, %v1061_v37 }
 0x34c   :  { %v1064_v52 = vrot.slane %v1063_v28, 1 }
 0x34e   :  { %v1065_v46 = vadd.f32 %v1064_v52, %v1063_v28 }
 0x350   :  { %1108 = vperm.xlu0 %1220, %v1065_v46  }
 0x3cb   :  { %v1109_v22 = vpop.permute.xlu0 %1108 }
 0x3cc   :  { %v1116_v16 = vsel %vm1105_vm4, %v1109_v22, %v1114_v51 }
 0x3cd   :  { %1117 = vst [vmem:[%s2472_s5] sm:$0xff] %v1116_v16 }

</bundles_post_ra>
